<compile_context>
chip_gen: v7x
topology: tpu7x:2x2x1
jax: 0.10.0
libtpu: 0.0.40
codegen_flags: <defaults>
</compile_context>

<pallas_src>
import math

import jax
import jax.numpy as jnp
from jax.experimental import pallas as pl
from jax.experimental.pallas import tpu as pltpu

# ----------------------------- configuration --------------------------------
B = 2            # batch
L = 8            # max_len / sequence length
E = 32           # embedding_size
NUM_HEADS = 4
DH = E // NUM_HEADS
HIDDEN = 64      # feed-forward hidden
NUM_LAYERS = 2
TOKEN_VOCAB = 50
SEG_VOCAB = 3
PAD_IDX = 0
LN_EPS = 1e-5
BL = B * L                   # 16 activation rows
HBL = NUM_HEADS * B * L      # 64 expanded key rows (head-major, then batch, then pos)


# ----------------------------- Pallas kernel ---------------------------------
def _layer_norm(x, gamma, beta):
    mean = jnp.mean(x, axis=-1, keepdims=True)
    var = jnp.mean((x - mean) ** 2, axis=-1, keepdims=True)
    return (x - mean) * jax.lax.rsqrt(var + LN_EPS) * gamma + beta


def fused_encoder_kernel(x0_ref, bias_ref, hm_ref,
                         wqkv_ref, bqkv_ref, wo_ref, bo_ref,
                         g1_ref, be1_ref, w1_ref, b1_ref,
                         w2_ref, b2_ref, g2_ref, be2_ref,
                         out_ref):
    x = x0_ref[...]          # (BL, E)   embeddings already summed in wrapper
    hm = hm_ref[...]         # (HBL, E)  head-lane mask: row's head owns these lanes
    bias = bias_ref[...]     # (BL, HBL) 0 for (same batch & valid key), else -1e9

    # Static unroll over layers: all weights stay resident in VMEM, the
    # activation never leaves VMEM, and there is zero per-layer grid overhead.
    for l in range(NUM_LAYERS):
        # ---- attention: fused QKV projection (scale already folded in Wq) ----
        qkv = jnp.dot(x, wqkv_ref[l], preferred_element_type=jnp.float32) + bqkv_ref[l]
        q = qkv[:, 0 * E:1 * E]                     # (BL, E)
        k = qkv[:, 1 * E:2 * E]
        v = qkv[:, 2 * E:3 * E]

        # Expand K/V to head-major (HBL, E) slabs, each row masked to its head's
        # lanes.  Row r -> head r // BL, source row r % BL (= batch*L + pos).
        k_exp = jnp.tile(k, (NUM_HEADS, 1)) * hm    # (HBL, E)
        v_exp = jnp.tile(v, (NUM_HEADS, 1)) * hm    # (HBL, E)

        # All batches' and heads' scores in ONE dot: s[q, j] = <Q_h(j)[q], K_h(j)[key(j)]>
        s = jax.lax.dot_general(q, k_exp, (((1,), (1,)), ((), ())),
                                preferred_element_type=jnp.float32) + bias
        # Row-uniform max shift is exact per head (softmax shift invariance).
        s = s - jnp.max(s, axis=-1, keepdims=True)
        p = jnp.exp(s)                              # (BL, HBL)

        # Per-head softmax denominators, already broadcast across each head's E
        # lanes, via one dot with the head-lane mask.  Normalize the CONTEXT so
        # the two dots depend only on p and pipeline back-to-back in the MXU.
        denom_e = jnp.dot(p, hm, preferred_element_type=jnp.float32)     # (BL, E)
        ctx = jnp.dot(p, v_exp, preferred_element_type=jnp.float32)      # (BL, E)
        # Clamp prevents inf/NaN even if an entire head's exponentials underflow.
        ctx = ctx * pl.reciprocal(jnp.maximum(denom_e, 1e-30), approx=True)

        attn = jnp.dot(ctx, wo_ref[l], preferred_element_type=jnp.float32) + bo_ref[l]
        x1 = _layer_norm(x + attn, g1_ref[l], be1_ref[l])

        # ---- feed-forward ----
        hdn = jnp.dot(x1, w1_ref[l], preferred_element_type=jnp.float32) + b1_ref[l]
        hdn = jnp.maximum(hdn, 0.0)                 # ReLU
        ff = jnp.dot(hdn, w2_ref[l], preferred_element_type=jnp.float32) + b2_ref[l]
        x = _layer_norm(x1 + ff, g2_ref[l], be2_ref[l])

    out_ref[...] = x                                # single HBM output write


# ----------------------------- wrapper ----------------------------------------
def encoder_forward(h, seg, h_mask, layer_params, seg_table, pos_emb):
    # --- glue (tiny): embedding gather + embed add, fused by XLA ---
    seg_emb = jnp.take(seg_table, seg, axis=0)                        # (B, L, E)
    x0 = (h + seg_emb + pos_emb[None]).reshape(BL, E)

    # Combined additive bias: -1e9 for cross-batch pairs and padded keys.
    q_batch = jnp.arange(BL) // L                                     # (BL,)
    kj = jnp.arange(HBL)
    k_within = kj % BL
    k_batch = k_within // L                                           # (HBL,)
    k_pos = k_within % L
    key_valid = h_mask[k_batch, k_pos] > 0                            # (HBL,)
    valid = (q_batch[:, None] == k_batch[None, :]) & key_valid[None, :]
    bias = jnp.where(valid, 0.0, -1e9).astype(jnp.float32)            # (BL, HBL)

    # Head-lane mask for the expanded (head-major) K/V slab.
    hm = ((jnp.arange(HBL)[:, None] // BL) ==
          (jnp.arange(E)[None, :] // DH)).astype(jnp.float32)         # (HBL, E)

    # Stack / fuse per-layer weights.  1/sqrt(DH) folded into Wq, bq.
    scale = 1.0 / math.sqrt(DH)

    def stack(fn):
        return jnp.stack([fn(p) for p in layer_params])

    wqkv = stack(lambda p: jnp.concatenate([p[0] * scale, p[2], p[4]], axis=1))  # (NL,E,3E)
    bqkv = stack(lambda p: jnp.concatenate([p[1] * scale, p[3], p[5]], axis=1))  # (NL,1,3E)
    wo = stack(lambda p: p[6]);  bo = stack(lambda p: p[7])
    g1 = stack(lambda p: p[8]);  be1 = stack(lambda p: p[9])
    w1 = stack(lambda p: p[10]); b1 = stack(lambda p: p[11])
    w2 = stack(lambda p: p[12]); b2 = stack(lambda p: p[13])
    g2 = stack(lambda p: p[14]); be2 = stack(lambda p: p[15])

    vmem = pl.BlockSpec(memory_space=pltpu.MemorySpace.VMEM)          # whole array in VMEM

    out2d = pl.pallas_call(
        fused_encoder_kernel,
        out_shape=jax.ShapeDtypeStruct((BL, E), jnp.float32),
        in_specs=[vmem] * 15,
        out_specs=vmem,
    )(x0, bias, hm,
      wqkv, bqkv, wo, bo, g1, be1, w1, b1, w2, b2, g2, be2)
    return out2d.reshape(B, L, E)


encoder_forward_jit = jax.jit(encoder_forward)


# ----------------------------- reference (pure JAX) ---------------------------
def encoder_reference(h, seg, h_mask, layer_params, seg_table, pos_emb):
    seg_emb = jnp.take(seg_table, seg, axis=0)
    mask_f = h_mask.astype(jnp.float32)[:, None, None, :]             # (B,1,1,L)
    x = h + seg_emb + pos_emb[None]
    for (wq, bq, wk, bk, wv, bv, wo, bo, g1, be1, w1, b1, w2, b2, g2, be2) in layer_params:
        q = (x @ wq + bq).reshape(B, L, NUM_HEADS, DH).transpose(0, 2, 1, 3)
        k = (x @ wk + bk).reshape(B, L, NUM_HEADS, DH).transpose(0, 2, 1, 3)
        v = (x @ wv + bv).reshape(B, L, NUM_HEADS, DH).transpose(0, 2, 1, 3)
        s = jnp.einsum("bhqd,bhkd->bhqk", q, k) / math.sqrt(DH)
        s = s + (1.0 - mask_f) * (-1e9)
        p = jax.nn.softmax(s, axis=-1)
        ctx = jnp.einsum("bhqk,bhkd->bhqd", p, v).transpose(0, 2, 1, 3).reshape(B, L, E)
        a = ctx @ wo + bo
        x1 = x + a
        mu = x1.mean(-1, keepdims=True)
        x1 = (x1 - mu) / jnp.sqrt(((x1 - mu) ** 2).mean(-1, keepdims=True) + LN_EPS) * g1 + be1
        f = jnp.maximum(x1 @ w1 + b1, 0.0) @ w2 + b2
        x2 = x1 + f
        mu = x2.mean(-1, keepdims=True)
        x = (x2 - mu) / jnp.sqrt(((x2 - mu) ** 2).mean(-1, keepdims=True) + LN_EPS) * g2 + be2
    return x


# ----------------------------- parameter init ---------------------------------
def make_params(key):
    def dense(k, i, o):
        return jax.random.normal(k, (i, o), jnp.float32) * 0.02

    layer_params = []
    for _ in range(NUM_LAYERS):
        keys = jax.random.split(key, 7)
        key = keys[0]
        wq = dense(keys[1], E, E); wk = dense(keys[2], E, E)
        wv = dense(keys[3], E, E); wo = dense(keys[4], E, E)
        w1 = dense(keys[5], E, HIDDEN); w2 = dense(keys[6], HIDDEN, E)
        zeros_e = jnp.zeros((1, E), jnp.float32)
        ones_e = jnp.ones((1, E), jnp.float32)
        zeros_h = jnp.zeros((1, HIDDEN), jnp.float32)
        layer_params.append((wq, zeros_e, wk, zeros_e, wv, zeros_e, wo, zeros_e,
                             ones_e, zeros_e, w1, zeros_h, w2, zeros_e,
                             ones_e, zeros_e))

    k_seg, key = jax.random.split(key)
    seg_table = jax.random.normal(k_seg, (SEG_VOCAB, E), jnp.float32) * 0.02
    seg_table = seg_table.at[PAD_IDX].set(0.0)             # padding_index -> zeros

    # sinusoidal positional embedding (L, E)
    pos = jnp.arange(L, dtype=jnp.float32)[:, None]
    i2 = jnp.arange(0, E, 2, dtype=jnp.float32)[None, :]
    div = jnp.exp(-i2 * math.log(10000.0) / E)
    pe = jnp.zeros((L, E), jnp.float32)
    pe = pe.at[:, 0::2].set(jnp.sin(pos * div))
    pe = pe.at[:, 1::2].set(jnp.cos(pos * div))

    return layer_params, seg_table, pe, key


# ----------------------------- main --------------------------------------------
if __name__ == "__main__":
    key = jax.random.PRNGKey(0)
    layer_params, seg_table, pos_emb, key = make_params(key)

    k_h, k_seg, key = jax.random.split(key, 3)
    h = jax.random.normal(k_h, (B, L, E), jnp.float32) * 0.1
    # valid tokens get segment id 1 or 2; padded positions get PAD_IDX (0)
    h_mask = jnp.array([[1, 1, 1, 1, 1, 1, 1, 1],
                        [1, 1, 1, 1, 1, 1, 0, 0]], jnp.int32)
    seg = jax.random.randint(k_seg, (B, L), 1, SEG_VOCAB) * h_mask

    out = encoder_forward_jit(h, seg, h_mask, layer_params, seg_table, pos_emb)
    out = jax.block_until_ready(out)

    ref = encoder_reference(h, seg, h_mask, layer_params, seg_table, pos_emb)
    assert out.shape == (B, L, E)
    assert jnp.allclose(out, ref, atol=1e-2, rtol=1e-2), \
        f"max abs err {jnp.max(jnp.abs(out - ref))}"

    print("KERNEL_OK")
</pallas_src>

<mosaic_0001>
module attributes {stable_mosaic.version = 11 : i64} {
  func.func @fused_encoder_kernel(%arg0: memref<16x32xf32, #tpu.memory_space<vmem>>, %arg1: memref<16x64xf32, #tpu.memory_space<vmem>>, %arg2: memref<64x32xf32, #tpu.memory_space<vmem>>, %arg3: memref<2x32x96xf32, #tpu.memory_space<vmem>>, %arg4: memref<2x1x96xf32, #tpu.memory_space<vmem>>, %arg5: memref<2x32x32xf32, #tpu.memory_space<vmem>>, %arg6: memref<2x1x32xf32, #tpu.memory_space<vmem>>, %arg7: memref<2x1x32xf32, #tpu.memory_space<vmem>>, %arg8: memref<2x1x32xf32, #tpu.memory_space<vmem>>, %arg9: memref<2x32x64xf32, #tpu.memory_space<vmem>>, %arg10: memref<2x1x64xf32, #tpu.memory_space<vmem>>, %arg11: memref<2x64x32xf32, #tpu.memory_space<vmem>>, %arg12: memref<2x1x32xf32, #tpu.memory_space<vmem>>, %arg13: memref<2x1x32xf32, #tpu.memory_space<vmem>>, %arg14: memref<2x1x32xf32, #tpu.memory_space<vmem>>, %arg15: memref<16x32xf32, #tpu.memory_space<vmem>>) attributes {dimension_semantics = [], scalar_prefetch = 0 : i64, scratch_operands = 0 : i64, tpu.core_type = #tpu.core_type<tc>} {
    %c0 = arith.constant 0 : index
    %c0_0 = arith.constant 0 : index
    %0 = vector.load %arg0[%c0, %c0_0] : memref<16x32xf32, #tpu.memory_space<vmem>>, vector<16x32xf32>
    %c0_1 = arith.constant 0 : index
    %c0_2 = arith.constant 0 : index
    %1 = vector.load %arg2[%c0_1, %c0_2] : memref<64x32xf32, #tpu.memory_space<vmem>>, vector<64x32xf32>
    %c0_3 = arith.constant 0 : index
    %c0_4 = arith.constant 0 : index
    %2 = vector.load %arg1[%c0_3, %c0_4] : memref<16x64xf32, #tpu.memory_space<vmem>>, vector<16x64xf32>
    %c0_5 = arith.constant 0 : index
    %c0_6 = arith.constant 0 : index
    %c0_7 = arith.constant 0 : index
    %3 = vector.load %arg3[%c0_5, %c0_6, %c0_7] : memref<2x32x96xf32, #tpu.memory_space<vmem>>, vector<1x32x96xf32>
    %4 = vector.shape_cast %3 : vector<1x32x96xf32> to vector<32x96xf32>
    %cst = arith.constant dense<0.000000e+00> : vector<16x96xf32>
    %5 = tpu.matmul %0, %4, %cst {dimension_numbers = #tpu.dot_dimension_numbers<[1], [0], [0], [1], [0, 0, 1, 1], [], []>} : vector<16x32xf32>, vector<32x96xf32>, vector<16x96xf32> -> vector<16x96xf32>
    %c0_8 = arith.constant 0 : index
    %c0_9 = arith.constant 0 : index
    %c0_10 = arith.constant 0 : index
    %6 = vector.load %arg4[%c0_8, %c0_9, %c0_10] : memref<2x1x96xf32, #tpu.memory_space<vmem>>, vector<1x1x96xf32>
    %7 = vector.shape_cast %6 : vector<1x1x96xf32> to vector<1x96xf32>
    %8 = vector.broadcast %7 : vector<1x96xf32> to vector<16x96xf32>
    %9 = arith.addf %5, %8 : vector<16x96xf32>
    %10 = vector.extract_strided_slice %9 {offsets = [0, 0], sizes = [16, 32], strides = [1, 1]} : vector<16x96xf32> to vector<16x32xf32>
    %11 = vector.extract_strided_slice %9 {offsets = [0, 32], sizes = [16, 32], strides = [1, 1]} : vector<16x96xf32> to vector<16x32xf32>
    %12 = vector.extract_strided_slice %9 {offsets = [0, 64], sizes = [16, 32], strides = [1, 1]} : vector<16x96xf32> to vector<16x32xf32>
    %13 = tpu.concatenate %11, %11, %11, %11 in 0 : vector<16x32xf32>, vector<16x32xf32>, vector<16x32xf32>, vector<16x32xf32> -> vector<64x32xf32>
    %14 = arith.mulf %13, %1 : vector<64x32xf32>
    %15 = tpu.concatenate %12, %12, %12, %12 in 0 : vector<16x32xf32>, vector<16x32xf32>, vector<16x32xf32>, vector<16x32xf32> -> vector<64x32xf32>
    %16 = arith.mulf %15, %1 : vector<64x32xf32>
    %cst_11 = arith.constant dense<0.000000e+00> : vector<16x64xf32>
    %17 = tpu.matmul %10, %14, %cst_11 {dimension_numbers = #tpu.dot_dimension_numbers<[1], [1], [0], [0], [0, 0, 1, 0], [], []>} : vector<16x32xf32>, vector<64x32xf32>, vector<16x64xf32> -> vector<16x64xf32>
    %18 = arith.addf %17, %2 : vector<16x64xf32>
    %cst_12 = arith.constant dense<0xFF800000> : vector<16xf32>
    %19 = vector.multi_reduction <maximumf>, %18, %cst_12 [1] : vector<16x64xf32> to vector<16xf32>
    %20 = vector.shape_cast %19 : vector<16xf32> to vector<16x1xf32>
    %21 = vector.broadcast %20 : vector<16x1xf32> to vector<16x64xf32>
    %22 = arith.subf %18, %21 : vector<16x64xf32>
    %23 = math.exp %22 : vector<16x64xf32>
    %cst_13 = arith.constant dense<0.000000e+00> : vector<16x32xf32>
    %24 = tpu.matmul %23, %1, %cst_13 {dimension_numbers = #tpu.dot_dimension_numbers<[1], [0], [0], [1], [0, 0, 1, 1], [], []>} : vector<16x64xf32>, vector<64x32xf32>, vector<16x32xf32> -> vector<16x32xf32>
    %cst_14 = arith.constant dense<0.000000e+00> : vector<16x32xf32>
    %25 = tpu.matmul %23, %16, %cst_14 {dimension_numbers = #tpu.dot_dimension_numbers<[1], [0], [0], [1], [0, 0, 1, 1], [], []>} : vector<16x64xf32>, vector<64x32xf32>, vector<16x32xf32> -> vector<16x32xf32>
    %cst_15 = arith.constant 1.000000e-30 : f32
    %26 = vector.broadcast %cst_15 : f32 to vector<16x32xf32>
    %27 = arith.maximumf %24, %26 : vector<16x32xf32>
    %28 = tpu.reciprocal %27 {approx = true} : vector<16x32xf32> -> vector<16x32xf32>
    %29 = arith.mulf %25, %28 : vector<16x32xf32>
    %c0_16 = arith.constant 0 : index
    %c0_17 = arith.constant 0 : index
    %c0_18 = arith.constant 0 : index
    %30 = vector.load %arg5[%c0_16, %c0_17, %c0_18] : memref<2x32x32xf32, #tpu.memory_space<vmem>>, vector<1x32x32xf32>
    %31 = vector.shape_cast %30 : vector<1x32x32xf32> to vector<32x32xf32>
    %cst_19 = arith.constant dense<0.000000e+00> : vector<16x32xf32>
    %32 = tpu.matmul %29, %31, %cst_19 {dimension_numbers = #tpu.dot_dimension_numbers<[1], [0], [0], [1], [0, 0, 1, 1], [], []>} : vector<16x32xf32>, vector<32x32xf32>, vector<16x32xf32> -> vector<16x32xf32>
    %c0_20 = arith.constant 0 : index
    %c0_21 = arith.constant 0 : index
    %c0_22 = arith.constant 0 : index
    %33 = vector.load %arg6[%c0_20, %c0_21, %c0_22] : memref<2x1x32xf32, #tpu.memory_space<vmem>>, vector<1x1x32xf32>
    %34 = vector.shape_cast %33 : vector<1x1x32xf32> to vector<1x32xf32>
    %35 = vector.broadcast %34 : vector<1x32xf32> to vector<16x32xf32>
    %36 = arith.addf %32, %35 : vector<16x32xf32>
    %37 = arith.addf %0, %36 : vector<16x32xf32>
    %c0_23 = arith.constant 0 : index
    %c0_24 = arith.constant 0 : index
    %c0_25 = arith.constant 0 : index
    %38 = vector.load %arg7[%c0_23, %c0_24, %c0_25] : memref<2x1x32xf32, #tpu.memory_space<vmem>>, vector<1x1x32xf32>
    %39 = vector.shape_cast %38 : vector<1x1x32xf32> to vector<1x32xf32>
    %c0_26 = arith.constant 0 : index
    %c0_27 = arith.constant 0 : index
    %c0_28 = arith.constant 0 : index
    %40 = vector.load %arg8[%c0_26, %c0_27, %c0_28] : memref<2x1x32xf32, #tpu.memory_space<vmem>>, vector<1x1x32xf32>
    %41 = vector.shape_cast %40 : vector<1x1x32xf32> to vector<1x32xf32>
    %cst_29 = arith.constant dense<0.000000e+00> : vector<16xf32>
    %42 = vector.multi_reduction <add>, %37, %cst_29 [1] : vector<16x32xf32> to vector<16xf32>
    %43 = vector.shape_cast %42 : vector<16xf32> to vector<16x1xf32>
    %cst_30 = arith.constant 3.200000e+01 : f32
    %44 = vector.broadcast %cst_30 : f32 to vector<16x1xf32>
    %45 = arith.divf %43, %44 : vector<16x1xf32>
    %46 = vector.broadcast %45 : vector<16x1xf32> to vector<16x32xf32>
    %47 = arith.subf %37, %46 : vector<16x32xf32>
    %48 = arith.mulf %47, %47 : vector<16x32xf32>
    %cst_31 = arith.constant dense<0.000000e+00> : vector<16xf32>
    %49 = vector.multi_reduction <add>, %48, %cst_31 [1] : vector<16x32xf32> to vector<16xf32>
    %50 = vector.shape_cast %49 : vector<16xf32> to vector<16x1xf32>
    %cst_32 = arith.constant 3.200000e+01 : f32
    %51 = vector.broadcast %cst_32 : f32 to vector<16x1xf32>
    %52 = arith.divf %50, %51 : vector<16x1xf32>
    %53 = vector.broadcast %45 : vector<16x1xf32> to vector<16x32xf32>
    %54 = arith.subf %37, %53 : vector<16x32xf32>
    %cst_33 = arith.constant 9.99999974E-6 : f32
    %55 = vector.broadcast %cst_33 : f32 to vector<16x1xf32>
    %56 = arith.addf %52, %55 : vector<16x1xf32>
    %57 = math.rsqrt %56 : vector<16x1xf32>
    %58 = vector.broadcast %57 : vector<16x1xf32> to vector<16x32xf32>
    %59 = arith.mulf %54, %58 : vector<16x32xf32>
    %60 = vector.broadcast %39 : vector<1x32xf32> to vector<16x32xf32>
    %61 = arith.mulf %59, %60 : vector<16x32xf32>
    %62 = vector.broadcast %41 : vector<1x32xf32> to vector<16x32xf32>
    %63 = arith.addf %61, %62 : vector<16x32xf32>
    %c0_34 = arith.constant 0 : index
    %c0_35 = arith.constant 0 : index
    %c0_36 = arith.constant 0 : index
    %64 = vector.load %arg9[%c0_34, %c0_35, %c0_36] : memref<2x32x64xf32, #tpu.memory_space<vmem>>, vector<1x32x64xf32>
    %65 = vector.shape_cast %64 : vector<1x32x64xf32> to vector<32x64xf32>
    %cst_37 = arith.constant dense<0.000000e+00> : vector<16x64xf32>
    %66 = tpu.matmul %63, %65, %cst_37 {dimension_numbers = #tpu.dot_dimension_numbers<[1], [0], [0], [1], [0, 0, 1, 1], [], []>} : vector<16x32xf32>, vector<32x64xf32>, vector<16x64xf32> -> vector<16x64xf32>
    %c0_38 = arith.constant 0 : index
    %c0_39 = arith.constant 0 : index
    %c0_40 = arith.constant 0 : index
    %67 = vector.load %arg10[%c0_38, %c0_39, %c0_40] : memref<2x1x64xf32, #tpu.memory_space<vmem>>, vector<1x1x64xf32>
    %68 = vector.shape_cast %67 : vector<1x1x64xf32> to vector<1x64xf32>
    %69 = vector.broadcast %68 : vector<1x64xf32> to vector<16x64xf32>
    %70 = arith.addf %66, %69 : vector<16x64xf32>
    %cst_41 = arith.constant 0.000000e+00 : f32
    %71 = vector.broadcast %cst_41 : f32 to vector<16x64xf32>
    %72 = arith.maximumf %70, %71 : vector<16x64xf32>
    %c0_42 = arith.constant 0 : index
    %c0_43 = arith.constant 0 : index
    %c0_44 = arith.constant 0 : index
    %73 = vector.load %arg11[%c0_42, %c0_43, %c0_44] : memref<2x64x32xf32, #tpu.memory_space<vmem>>, vector<1x64x32xf32>
    %74 = vector.shape_cast %73 : vector<1x64x32xf32> to vector<64x32xf32>
    %cst_45 = arith.constant dense<0.000000e+00> : vector<16x32xf32>
    %75 = tpu.matmul %72, %74, %cst_45 {dimension_numbers = #tpu.dot_dimension_numbers<[1], [0], [0], [1], [0, 0, 1, 1], [], []>} : vector<16x64xf32>, vector<64x32xf32>, vector<16x32xf32> -> vector<16x32xf32>
    %c0_46 = arith.constant 0 : index
    %c0_47 = arith.constant 0 : index
    %c0_48 = arith.constant 0 : index
    %76 = vector.load %arg12[%c0_46, %c0_47, %c0_48] : memref<2x1x32xf32, #tpu.memory_space<vmem>>, vector<1x1x32xf32>
    %77 = vector.shape_cast %76 : vector<1x1x32xf32> to vector<1x32xf32>
    %78 = vector.broadcast %77 : vector<1x32xf32> to vector<16x32xf32>
    %79 = arith.addf %75, %78 : vector<16x32xf32>
    %80 = arith.addf %63, %79 : vector<16x32xf32>
    %c0_49 = arith.constant 0 : index
    %c0_50 = arith.constant 0 : index
    %c0_51 = arith.constant 0 : index
    %81 = vector.load %arg13[%c0_49, %c0_50, %c0_51] : memref<2x1x32xf32, #tpu.memory_space<vmem>>, vector<1x1x32xf32>
    %82 = vector.shape_cast %81 : vector<1x1x32xf32> to vector<1x32xf32>
    %c0_52 = arith.constant 0 : index
    %c0_53 = arith.constant 0 : index
    %c0_54 = arith.constant 0 : index
    %83 = vector.load %arg14[%c0_52, %c0_53, %c0_54] : memref<2x1x32xf32, #tpu.memory_space<vmem>>, vector<1x1x32xf32>
    %84 = vector.shape_cast %83 : vector<1x1x32xf32> to vector<1x32xf32>
    %cst_55 = arith.constant dense<0.000000e+00> : vector<16xf32>
    %85 = vector.multi_reduction <add>, %80, %cst_55 [1] : vector<16x32xf32> to vector<16xf32>
    %86 = vector.shape_cast %85 : vector<16xf32> to vector<16x1xf32>
    %cst_56 = arith.constant 3.200000e+01 : f32
    %87 = vector.broadcast %cst_56 : f32 to vector<16x1xf32>
    %88 = arith.divf %86, %87 : vector<16x1xf32>
    %89 = vector.broadcast %88 : vector<16x1xf32> to vector<16x32xf32>
    %90 = arith.subf %80, %89 : vector<16x32xf32>
    %91 = arith.mulf %90, %90 : vector<16x32xf32>
    %cst_57 = arith.constant dense<0.000000e+00> : vector<16xf32>
    %92 = vector.multi_reduction <add>, %91, %cst_57 [1] : vector<16x32xf32> to vector<16xf32>
    %93 = vector.shape_cast %92 : vector<16xf32> to vector<16x1xf32>
    %cst_58 = arith.constant 3.200000e+01 : f32
    %94 = vector.broadcast %cst_58 : f32 to vector<16x1xf32>
    %95 = arith.divf %93, %94 : vector<16x1xf32>
    %96 = vector.broadcast %88 : vector<16x1xf32> to vector<16x32xf32>
    %97 = arith.subf %80, %96 : vector<16x32xf32>
    %cst_59 = arith.constant 9.99999974E-6 : f32
    %98 = vector.broadcast %cst_59 : f32 to vector<16x1xf32>
    %99 = arith.addf %95, %98 : vector<16x1xf32>
    %100 = math.rsqrt %99 : vector<16x1xf32>
    %101 = vector.broadcast %100 : vector<16x1xf32> to vector<16x32xf32>
    %102 = arith.mulf %97, %101 : vector<16x32xf32>
    %103 = vector.broadcast %82 : vector<1x32xf32> to vector<16x32xf32>
    %104 = arith.mulf %102, %103 : vector<16x32xf32>
    %105 = vector.broadcast %84 : vector<1x32xf32> to vector<16x32xf32>
    %106 = arith.addf %104, %105 : vector<16x32xf32>
    %c1 = arith.constant 1 : index
    %c0_60 = arith.constant 0 : index
    %c0_61 = arith.constant 0 : index
    %107 = vector.load %arg3[%c1, %c0_60, %c0_61] : memref<2x32x96xf32, #tpu.memory_space<vmem>>, vector<1x32x96xf32>
    %108 = vector.shape_cast %107 : vector<1x32x96xf32> to vector<32x96xf32>
    %cst_62 = arith.constant dense<0.000000e+00> : vector<16x96xf32>
    %109 = tpu.matmul %106, %108, %cst_62 {dimension_numbers = #tpu.dot_dimension_numbers<[1], [0], [0], [1], [0, 0, 1, 1], [], []>} : vector<16x32xf32>, vector<32x96xf32>, vector<16x96xf32> -> vector<16x96xf32>
    %c1_63 = arith.constant 1 : index
    %c0_64 = arith.constant 0 : index
    %c0_65 = arith.constant 0 : index
    %110 = vector.load %arg4[%c1_63, %c0_64, %c0_65] : memref<2x1x96xf32, #tpu.memory_space<vmem>>, vector<1x1x96xf32>
    %111 = vector.shape_cast %110 : vector<1x1x96xf32> to vector<1x96xf32>
    %112 = vector.broadcast %111 : vector<1x96xf32> to vector<16x96xf32>
    %113 = arith.addf %109, %112 : vector<16x96xf32>
    %114 = vector.extract_strided_slice %113 {offsets = [0, 0], sizes = [16, 32], strides = [1, 1]} : vector<16x96xf32> to vector<16x32xf32>
    %115 = vector.extract_strided_slice %113 {offsets = [0, 32], sizes = [16, 32], strides = [1, 1]} : vector<16x96xf32> to vector<16x32xf32>
    %116 = vector.extract_strided_slice %113 {offsets = [0, 64], sizes = [16, 32], strides = [1, 1]} : vector<16x96xf32> to vector<16x32xf32>
    %117 = tpu.concatenate %115, %115, %115, %115 in 0 : vector<16x32xf32>, vector<16x32xf32>, vector<16x32xf32>, vector<16x32xf32> -> vector<64x32xf32>
    %118 = arith.mulf %117, %1 : vector<64x32xf32>
    %119 = tpu.concatenate %116, %116, %116, %116 in 0 : vector<16x32xf32>, vector<16x32xf32>, vector<16x32xf32>, vector<16x32xf32> -> vector<64x32xf32>
    %120 = arith.mulf %119, %1 : vector<64x32xf32>
    %cst_66 = arith.constant dense<0.000000e+00> : vector<16x64xf32>
    %121 = tpu.matmul %114, %118, %cst_66 {dimension_numbers = #tpu.dot_dimension_numbers<[1], [1], [0], [0], [0, 0, 1, 0], [], []>} : vector<16x32xf32>, vector<64x32xf32>, vector<16x64xf32> -> vector<16x64xf32>
    %122 = arith.addf %121, %2 : vector<16x64xf32>
    %cst_67 = arith.constant dense<0xFF800000> : vector<16xf32>
    %123 = vector.multi_reduction <maximumf>, %122, %cst_67 [1] : vector<16x64xf32> to vector<16xf32>
    %124 = vector.shape_cast %123 : vector<16xf32> to vector<16x1xf32>
    %125 = vector.broadcast %124 : vector<16x1xf32> to vector<16x64xf32>
    %126 = arith.subf %122, %125 : vector<16x64xf32>
    %127 = math.exp %126 : vector<16x64xf32>
    %cst_68 = arith.constant dense<0.000000e+00> : vector<16x32xf32>
    %128 = tpu.matmul %127, %1, %cst_68 {dimension_numbers = #tpu.dot_dimension_numbers<[1], [0], [0], [1], [0, 0, 1, 1], [], []>} : vector<16x64xf32>, vector<64x32xf32>, vector<16x32xf32> -> vector<16x32xf32>
    %cst_69 = arith.constant dense<0.000000e+00> : vector<16x32xf32>
    %129 = tpu.matmul %127, %120, %cst_69 {dimension_numbers = #tpu.dot_dimension_numbers<[1], [0], [0], [1], [0, 0, 1, 1], [], []>} : vector<16x64xf32>, vector<64x32xf32>, vector<16x32xf32> -> vector<16x32xf32>
    %cst_70 = arith.constant 1.000000e-30 : f32
    %130 = vector.broadcast %cst_70 : f32 to vector<16x32xf32>
    %131 = arith.maximumf %128, %130 : vector<16x32xf32>
    %132 = tpu.reciprocal %131 {approx = true} : vector<16x32xf32> -> vector<16x32xf32>
    %133 = arith.mulf %129, %132 : vector<16x32xf32>
    %c1_71 = arith.constant 1 : index
    %c0_72 = arith.constant 0 : index
    %c0_73 = arith.constant 0 : index
    %134 = vector.load %arg5[%c1_71, %c0_72, %c0_73] : memref<2x32x32xf32, #tpu.memory_space<vmem>>, vector<1x32x32xf32>
    %135 = vector.shape_cast %134 : vector<1x32x32xf32> to vector<32x32xf32>
    %cst_74 = arith.constant dense<0.000000e+00> : vector<16x32xf32>
    %136 = tpu.matmul %133, %135, %cst_74 {dimension_numbers = #tpu.dot_dimension_numbers<[1], [0], [0], [1], [0, 0, 1, 1], [], []>} : vector<16x32xf32>, vector<32x32xf32>, vector<16x32xf32> -> vector<16x32xf32>
    %c1_75 = arith.constant 1 : index
    %c0_76 = arith.constant 0 : index
    %c0_77 = arith.constant 0 : index
    %137 = vector.load %arg6[%c1_75, %c0_76, %c0_77] : memref<2x1x32xf32, #tpu.memory_space<vmem>>, vector<1x1x32xf32>
    %138 = vector.shape_cast %137 : vector<1x1x32xf32> to vector<1x32xf32>
    %139 = vector.broadcast %138 : vector<1x32xf32> to vector<16x32xf32>
    %140 = arith.addf %136, %139 : vector<16x32xf32>
    %141 = arith.addf %106, %140 : vector<16x32xf32>
    %c1_78 = arith.constant 1 : index
    %c0_79 = arith.constant 0 : index
    %c0_80 = arith.constant 0 : index
    %142 = vector.load %arg7[%c1_78, %c0_79, %c0_80] : memref<2x1x32xf32, #tpu.memory_space<vmem>>, vector<1x1x32xf32>
    %143 = vector.shape_cast %142 : vector<1x1x32xf32> to vector<1x32xf32>
    %c1_81 = arith.constant 1 : index
    %c0_82 = arith.constant 0 : index
    %c0_83 = arith.constant 0 : index
    %144 = vector.load %arg8[%c1_81, %c0_82, %c0_83] : memref<2x1x32xf32, #tpu.memory_space<vmem>>, vector<1x1x32xf32>
    %145 = vector.shape_cast %144 : vector<1x1x32xf32> to vector<1x32xf32>
    %cst_84 = arith.constant dense<0.000000e+00> : vector<16xf32>
    %146 = vector.multi_reduction <add>, %141, %cst_84 [1] : vector<16x32xf32> to vector<16xf32>
    %147 = vector.shape_cast %146 : vector<16xf32> to vector<16x1xf32>
    %cst_85 = arith.constant 3.200000e+01 : f32
    %148 = vector.broadcast %cst_85 : f32 to vector<16x1xf32>
    %149 = arith.divf %147, %148 : vector<16x1xf32>
    %150 = vector.broadcast %149 : vector<16x1xf32> to vector<16x32xf32>
    %151 = arith.subf %141, %150 : vector<16x32xf32>
    %152 = arith.mulf %151, %151 : vector<16x32xf32>
    %cst_86 = arith.constant dense<0.000000e+00> : vector<16xf32>
    %153 = vector.multi_reduction <add>, %152, %cst_86 [1] : vector<16x32xf32> to vector<16xf32>
    %154 = vector.shape_cast %153 : vector<16xf32> to vector<16x1xf32>
    %cst_87 = arith.constant 3.200000e+01 : f32
    %155 = vector.broadcast %cst_87 : f32 to vector<16x1xf32>
    %156 = arith.divf %154, %155 : vector<16x1xf32>
    %157 = vector.broadcast %149 : vector<16x1xf32> to vector<16x32xf32>
    %158 = arith.subf %141, %157 : vector<16x32xf32>
    %cst_88 = arith.constant 9.99999974E-6 : f32
    %159 = vector.broadcast %cst_88 : f32 to vector<16x1xf32>
    %160 = arith.addf %156, %159 : vector<16x1xf32>
    %161 = math.rsqrt %160 : vector<16x1xf32>
    %162 = vector.broadcast %161 : vector<16x1xf32> to vector<16x32xf32>
    %163 = arith.mulf %158, %162 : vector<16x32xf32>
    %164 = vector.broadcast %143 : vector<1x32xf32> to vector<16x32xf32>
    %165 = arith.mulf %163, %164 : vector<16x32xf32>
    %166 = vector.broadcast %145 : vector<1x32xf32> to vector<16x32xf32>
    %167 = arith.addf %165, %166 : vector<16x32xf32>
    %c1_89 = arith.constant 1 : index
    %c0_90 = arith.constant 0 : index
    %c0_91 = arith.constant 0 : index
    %168 = vector.load %arg9[%c1_89, %c0_90, %c0_91] : memref<2x32x64xf32, #tpu.memory_space<vmem>>, vector<1x32x64xf32>
    %169 = vector.shape_cast %168 : vector<1x32x64xf32> to vector<32x64xf32>
    %cst_92 = arith.constant dense<0.000000e+00> : vector<16x64xf32>
    %170 = tpu.matmul %167, %169, %cst_92 {dimension_numbers = #tpu.dot_dimension_numbers<[1], [0], [0], [1], [0, 0, 1, 1], [], []>} : vector<16x32xf32>, vector<32x64xf32>, vector<16x64xf32> -> vector<16x64xf32>
    %c1_93 = arith.constant 1 : index
    %c0_94 = arith.constant 0 : index
    %c0_95 = arith.constant 0 : index
    %171 = vector.load %arg10[%c1_93, %c0_94, %c0_95] : memref<2x1x64xf32, #tpu.memory_space<vmem>>, vector<1x1x64xf32>
    %172 = vector.shape_cast %171 : vector<1x1x64xf32> to vector<1x64xf32>
    %173 = vector.broadcast %172 : vector<1x64xf32> to vector<16x64xf32>
    %174 = arith.addf %170, %173 : vector<16x64xf32>
    %cst_96 = arith.constant 0.000000e+00 : f32
    %175 = vector.broadcast %cst_96 : f32 to vector<16x64xf32>
    %176 = arith.maximumf %174, %175 : vector<16x64xf32>
    %c1_97 = arith.constant 1 : index
    %c0_98 = arith.constant 0 : index
    %c0_99 = arith.constant 0 : index
    %177 = vector.load %arg11[%c1_97, %c0_98, %c0_99] : memref<2x64x32xf32, #tpu.memory_space<vmem>>, vector<1x64x32xf32>
    %178 = vector.shape_cast %177 : vector<1x64x32xf32> to vector<64x32xf32>
    %cst_100 = arith.constant dense<0.000000e+00> : vector<16x32xf32>
    %179 = tpu.matmul %176, %178, %cst_100 {dimension_numbers = #tpu.dot_dimension_numbers<[1], [0], [0], [1], [0, 0, 1, 1], [], []>} : vector<16x64xf32>, vector<64x32xf32>, vector<16x32xf32> -> vector<16x32xf32>
    %c1_101 = arith.constant 1 : index
    %c0_102 = arith.constant 0 : index
    %c0_103 = arith.constant 0 : index
    %180 = vector.load %arg12[%c1_101, %c0_102, %c0_103] : memref<2x1x32xf32, #tpu.memory_space<vmem>>, vector<1x1x32xf32>
    %181 = vector.shape_cast %180 : vector<1x1x32xf32> to vector<1x32xf32>
    %182 = vector.broadcast %181 : vector<1x32xf32> to vector<16x32xf32>
    %183 = arith.addf %179, %182 : vector<16x32xf32>
    %184 = arith.addf %167, %183 : vector<16x32xf32>
    %c1_104 = arith.constant 1 : index
    %c0_105 = arith.constant 0 : index
    %c0_106 = arith.constant 0 : index
    %185 = vector.load %arg13[%c1_104, %c0_105, %c0_106] : memref<2x1x32xf32, #tpu.memory_space<vmem>>, vector<1x1x32xf32>
    %186 = vector.shape_cast %185 : vector<1x1x32xf32> to vector<1x32xf32>
    %c1_107 = arith.constant 1 : index
    %c0_108 = arith.constant 0 : index
    %c0_109 = arith.constant 0 : index
    %187 = vector.load %arg14[%c1_107, %c0_108, %c0_109] : memref<2x1x32xf32, #tpu.memory_space<vmem>>, vector<1x1x32xf32>
    %188 = vector.shape_cast %187 : vector<1x1x32xf32> to vector<1x32xf32>
    %cst_110 = arith.constant dense<0.000000e+00> : vector<16xf32>
    %189 = vector.multi_reduction <add>, %184, %cst_110 [1] : vector<16x32xf32> to vector<16xf32>
    %190 = vector.shape_cast %189 : vector<16xf32> to vector<16x1xf32>
    %cst_111 = arith.constant 3.200000e+01 : f32
    %191 = vector.broadcast %cst_111 : f32 to vector<16x1xf32>
    %192 = arith.divf %190, %191 : vector<16x1xf32>
    %193 = vector.broadcast %192 : vector<16x1xf32> to vector<16x32xf32>
    %194 = arith.subf %184, %193 : vector<16x32xf32>
    %195 = arith.mulf %194, %194 : vector<16x32xf32>
    %cst_112 = arith.constant dense<0.000000e+00> : vector<16xf32>
    %196 = vector.multi_reduction <add>, %195, %cst_112 [1] : vector<16x32xf32> to vector<16xf32>
    %197 = vector.shape_cast %196 : vector<16xf32> to vector<16x1xf32>
    %cst_113 = arith.constant 3.200000e+01 : f32
    %198 = vector.broadcast %cst_113 : f32 to vector<16x1xf32>
    %199 = arith.divf %197, %198 : vector<16x1xf32>
    %200 = vector.broadcast %192 : vector<16x1xf32> to vector<16x32xf32>
    %201 = arith.subf %184, %200 : vector<16x32xf32>
    %cst_114 = arith.constant 9.99999974E-6 : f32
    %202 = vector.broadcast %cst_114 : f32 to vector<16x1xf32>
    %203 = arith.addf %199, %202 : vector<16x1xf32>
    %204 = math.rsqrt %203 : vector<16x1xf32>
    %205 = vector.broadcast %204 : vector<16x1xf32> to vector<16x32xf32>
    %206 = arith.mulf %201, %205 : vector<16x32xf32>
    %207 = vector.broadcast %186 : vector<1x32xf32> to vector<16x32xf32>
    %208 = arith.mulf %206, %207 : vector<16x32xf32>
    %209 = vector.broadcast %188 : vector<1x32xf32> to vector<16x32xf32>
    %210 = arith.addf %208, %209 : vector<16x32xf32>
    %c0_115 = arith.constant 0 : index
    %c0_116 = arith.constant 0 : index
    %211 = vector.load %arg15[%c0_115, %c0_116] : memref<16x32xf32, #tpu.memory_space<vmem>>, vector<16x32xf32>
    tpu.vector_store %arg15[%c0_115, %c0_116], %210 {strides = array<i32>} : memref<16x32xf32, #tpu.memory_space<vmem>>, vector<16x32xf32>,
    return
  }
}

</mosaic_0001>

<bundles_post_ra>
// kernel: encoder_forward.1
= control target key start
LH: loop header
LB: loop body
LE: loop exit
PB: predicated region body
PF: predicated region fallthrough
CT: control target
= control target key end

     0   :  { %vm74_vm0 = vcmask 261120   ;;  %s2526_s17 = smov 32   ;;  %s3095_s0 = inlined_call_operand.vmem [shape: f32[16,32], index: 0, kind: input, shape index: {}]   ;;  %s3096_s1 = inlined_call_operand.vmem [shape: f32[16,64], index: 1, kind: input, shape index: {}]   ;;  %s3097_s2 = inlined_call_operand.vmem [shape: f32[64,32], index: 2, kind: input, shape index: {}]   ;;  %s3098_s3 = inlined_call_operand.vmem [shape: f32[2,32,96], index: 3, kind: input, shape index: {}]   ;;  %s3099_s4 = inlined_call_operand.vmem [shape: f32[2,1,96], index: 4, kind: input, shape index: {}]   ;;  %s3100_s5 = inlined_call_operand.vmem [shape: f32[2,32,32], index: 5, kind: input, shape index: {}]   ;;  %s3101_s6 = inlined_call_operand.vmem [shape: f32[2,1,32], index: 6, kind: input, shape index: {}]   ;;  %s3102_s7 = inlined_call_operand.vmem [shape: f32[2,1,32], index: 7, kind: input, shape index: {}]   ;;  %s3103_s8 = inlined_call_operand.vmem [shape: f32[2,1,32], index: 8, kind: input, shape index: {}]   ;;  %s3104_s9 = inlined_call_operand.vmem [shape: f32[2,32,64], index: 9, kind: input, shape index: {}]   ;;  %s3105_s10 = inlined_call_operand.vmem [shape: f32[2,1,64], index: 10, kind: input, shape index: {}]   ;;  %s3106_s11 = inlined_call_operand.vmem [shape: f32[2,64,32], index: 11, kind: input, shape index: {}]   ;;  %s3107_s12 = inlined_call_operand.vmem [shape: f32[2,1,32], index: 12, kind: input, shape index: {}]   ;;  %s3108_s13 = inlined_call_operand.vmem [shape: f32[2,1,32], index: 13, kind: input, shape index: {}]   ;;  %s3109_s14 = inlined_call_operand.vmem [shape: f32[2,1,32], index: 14, kind: input, shape index: {}]   ;;  %s3110_s15 = inlined_call_operand.hbm [shape: f32[16,32], index: 15, kind: output, shape index: {}]  }
   0x1   :  { %v63_v0 = vld [vmem:[%s3098_s3] sm:$0xff]  ;;  %v64_v1 = vld [vmem:[%s3098_s3 + $0x8] sm:$0xff]  ;;  %v65_v2 = vld [vmem:[%s3098_s3 + $0x10] sm:$0xff] }
   0x2   :  { %v2192_v3 = vpack.c.bf16 %v64_v1, %v63_v0  ;;  %v66_v4 = vld [vmem:[%s3098_s3 + $0x18] sm:$0xff]  ;;  %v2627_v5 = vld [vmem:[%s3095_s0] sm:$0xff]  ;;  %v2634_v7 = vld [vmem:[%s3097_s2 + $0x10] sm:$0xff] }
   0x3   :  { %v2196_v6 = vpack.c.bf16 %v66_v4, %v65_v2  ;;  %1982 = vmatprep.mubr.msk.f32.mxu1 %vm74_vm0, %v2627_v5  ;;  %v2639_v8 = vld [vmem:[%s3097_s2] sm:$0xff]  ;;  %168 = vrot.lane.b32.xlu1 %v2634_v7, %s2526_s17  ;;  %v54_v9 = vld [vmem:[%s3097_s2 + $0x8] sm:$0xff]  ;;  %v56_v10 = vld [vmem:[%s3097_s2 + $0x18] sm:$0xff] }
   0x4   :  { %2193 = vmatprep.subr.bf16.mxu1 %v2192_v3  ;;  %164 = vrot.lane.b32.xlu0 %v2639_v8, %s2526_s17  ;;  %v2650_v11 = vpack.c.bf16 %v54_v9, %v2639_v8 }
   0x5   :  { %2195 = vmatpush3.bf16.msra.mxu1 %v2192_v3 }
   0x6   :  { %20 = vsyncpa [#allocation3], 0  ;;  %2197 = vmatprep.subr.bf16.mxu1 %v2196_v6  ;;  %v2653_v12 = vpack.c.bf16 %v56_v10, %v2634_v7  ;;  %2225 = vmatprep.subr.bf16.mxu0 %v2650_v11  ;;  %v2660_v13 = vld [vmem:[%s3095_s0 + $0x8] sm:$0xff]  ;;  %v57_v15 = vld [vmem:[%s3097_s2 + $0x20] sm:$0xff]  ;;  %s2528_s18 = smov 64   ;;  %vm349_vm2 = vcmask 523264  }
   0x7   :  { %170 = vrot.lane.b32.xlu1 %v56_v10, %s2526_s17  ;;  %2227 = vmatpush3.bf16.msra.mxu0 %v2650_v11  ;;  %v58_v14 = vld [vmem:[%s3097_s2 + $0x28] sm:$0xff]  ;;  %v60_v17 = vld [vmem:[%s3097_s2 + $0x38] sm:$0xff]  ;;  %v59_v18 = vld [vmem:[%s3097_s2 + $0x30] sm:$0xff] }
   0x8   :  { %166 = vrot.lane.b32.xlu0 %v54_v9, %s2526_s17  ;;  %v2668_v16 = vpack.c.bf16 %v58_v14, %v57_v15  ;;  %2229 = vmatprep.subr.bf16.mxu0 %v2653_v12  ;;  %v2680_v19 = vpack.c.bf16 %v60_v17, %v59_v18  ;;  %v1770_v26 = vld [vmem:[%s3099_s4] ss:$0 sm:$0xff]  ;;  %vm2743_vm1 = vmpackc.low %vm74_vm0, %vm74_vm0  ;;  %v2772_v0 = vld [vmem:[%s3096_s1 + $0x8] sm:$0xff] }
   0x9   :  { %2199 = vmatpush3.bf16.msra.mxu1 %v2196_v6  ;;  %v2777_v1 = vld [vmem:[%s3096_s1] sm:$0xff] }
   0xb   :  { %174 = vrot.lane.b32.xlu1 %v58_v14, %s2526_s17  ;;  %2231 = vmatpush3.bf16.msra.mxu0 %v2653_v12 }
   0xc   :  { %1983 = vmatmul.mubr.msk.f32.vlgmr.msra.gmra.mrb[0].mxu1 %vm74_vm0, %v2660_v13  ;;  %172 = vrot.lane.b32.xlu0 %v57_v15, %s2526_s17 }
   0xd   :  { %2233 = vmatprep.subr.bf16.mxu0 %v2668_v16 }
   0xf   :  { %178 = vrot.lane.b32.xlu1 %v60_v17, %s2526_s17  ;;  %2235 = vmatpush3.bf16.msra.mxu0 %v2668_v16 }
  0x10   :  { %176 = vrot.lane.b32.xlu0 %v59_v18, %s2526_s17  ;;  %2237 = vmatprep.subr.bf16.mxu0 %v2680_v19  ;;  %s2527_s17 = smov 96  }
  0x13   :  { %2239 = vmatpush3.bf16.msra.mxu0 %v2680_v19 }
  0x75   :  { %v2686_v20 = vpop.permute.xlu1 %168 }
  0x76   :  { %v2688_v21 = vpop.permute.xlu0 %164 }
  0x79   :  { %v2690_v22 = vpop.permute.xlu1 %170 }
  0x7a   :  { %v2692_v23 = vpop.permute.xlu0 %166 }
  0x7d   :  { %v2694_v24 = vpop.permute.xlu1 %174 }
  0x7e   :  { %v2696_v25 = vpop.permute.xlu0 %172 }
  0x81   :  { %v2705_v31 = vpop.permute.xlu1 %178 }
  0x82   :  { %v2707_v32 = vpop.permute.xlu0 %176 }
  0xdf   :  { %v1984_v27 = vpop.f32.mrb[0].mxu1 }
  0xe0   :  { %v2701_v28 = vadd.f32 %v1984_v27, %v1770_v26  ;;  %v147_v29 = vpop.f32.mrb[1].mxu1 }
  0xe1   :  { %v2703_v30 = vadd.f32 %v1770_v26, %v147_v29 }
  0xe2   :  { %v191_v33 = vmul.f32 %v2690_v22, %v2701_v28  ;;  %v189_v34 = vmul.f32 %v2692_v23, %v2701_v28  ;;  %v195_v37 = vmul.f32 %v2705_v31, %v2701_v28  ;;  %v193_v38 = vmul.f32 %v2694_v24, %v2701_v28 }
  0xe3   :  { %2001 = vmatprep.mubr.msk.f32.mxu1 %vm74_vm0, %v2703_v30  ;;  %v190_v35 = vmul.f32 %v2686_v20, %v2703_v30  ;;  %v188_v36 = vmul.f32 %v2688_v21, %v2703_v30  ;;  %v194_v39 = vmul.f32 %v2707_v32, %v2703_v30  ;;  %v192_v42 = vmul.f32 %v2696_v25, %v2703_v30 }
  0xe5   :  { %v2395_v40 = vpack.i.bf16 %v191_v33, %v190_v35  ;;  %v2390_v41 = vpack.i.bf16 %v189_v34, %v188_v36  ;;  %v2405_v43 = vpack.i.bf16 %v195_v37, %v194_v39  ;;  %v2400_v44 = vpack.i.bf16 %v193_v38, %v192_v42 }
  0xe7   :  { %2396 = vrot.lane.b32.xlu1 %v2395_v40, %s2527_s17  ;;  %2391 = vrot.lane.b32.xlu0 %v2390_v41, %s2527_s17 }
  0xeb   :  { %2406 = vrot.lane.b32.xlu1 %v2405_v43, %s2527_s17  ;;  %2401 = vrot.lane.b32.xlu0 %v2400_v44, %s2527_s17 }
  0xef   :  { %198 = vrot.lane.b32.xlu1 %v54_v9, %s2528_s18  ;;  %196 = vrot.lane.b32.xlu0 %v2639_v8, %s2528_s18 }
  0xf3   :  { %202 = vrot.lane.b32.xlu1 %v56_v10, %s2528_s18  ;;  %200 = vrot.lane.b32.xlu0 %v2634_v7, %s2528_s18 }
  0xf7   :  { %206 = vrot.lane.b32.xlu1 %v58_v14, %s2528_s18  ;;  %204 = vrot.lane.b32.xlu0 %v57_v15, %s2528_s18 }
  0xfb   :  { %210 = vrot.lane.b32.xlu1 %v60_v17, %s2528_s18  ;;  %208 = vrot.lane.b32.xlu0 %v59_v18, %s2528_s18 }
 0x159   :  { %v2397_v45 = vpop.permute.xlu1 %2396  ;;  %v2392_v46 = vpop.permute.xlu0 %2391 }
 0x15a   :  { %v2399_v47 = vunpack.i.h.bf16 %v2397_v45  ;;  %v2398_v48 = vunpack.i.l.bf16 %v2397_v45  ;;  %v2394_v49 = vunpack.i.h.bf16 %v2392_v46  ;;  %v2393_v50 = vunpack.i.l.bf16 %v2392_v46 }
 0x15c   :  { %v2200_v52 = vpack.c.bf16 %v2394_v49, %v2393_v50  ;;  %v2206_v53 = vpack.c.bf16 %v2399_v47, %v2398_v48 }
 0x15d   :  { %v2402_v54 = vpop.permute.xlu0 %2401  ;;  %v2407_v58 = vpop.permute.xlu1 %2406 }
 0x15e   :  { %2202 = vmatprep.subr.msk.bf16.mxu1 %vm2743_vm1, %v2200_v52  ;;  %v2404_v55 = vunpack.i.h.bf16 %v2402_v54  ;;  %v2403_v56 = vunpack.i.l.bf16 %v2402_v54  ;;  %v2409_v59 = vunpack.i.h.bf16 %v2407_v58  ;;  %v2408_v60 = vunpack.i.l.bf16 %v2407_v58 }
 0x15f   :  { %2205 = vmatpush3.bf16.xpose.msk.msra.mxu1 %vm2743_vm1, %v2200_v52 }
 0x160   :  { %2208 = vmatprep.subr.msk.bf16.mxu1 %vm2743_vm1, %v2206_v53  ;;  %v2212_v57 = vpack.c.bf16 %v2404_v55, %v2403_v56  ;;  %v2218_v61 = vpack.c.bf16 %v2409_v59, %v2408_v60 }
 0x161   :  { %v2765_v62 = vpop.permute.xlu1 %198  ;;  %v2767_v63 = vpop.permute.xlu0 %196 }
 0x162   :  { %v221_v35 = vmul.f32 %v2765_v62, %v2701_v28  ;;  %v220_v36 = vmul.f32 %v2767_v63, %v2703_v30 }
 0x164   :  { %v2410_v38 = vpack.i.bf16 %v221_v35, %v220_v36 }
 0x165   :  { %v2782_v8 = vpop.permute.xlu1 %202  ;;  %v2784_v9 = vpop.permute.xlu0 %200 }
 0x166   :  { %v223_v17 = vmul.f32 %v2782_v8, %v2701_v28  ;;  %v222_v18 = vmul.f32 %v2784_v9, %v2703_v30 }
 0x167   :  { %2211 = vmatpush3.bf16.xpose.msk.msra.mxu1 %vm2743_vm1, %v2206_v53 }
 0x168   :  { %2214 = vmatprep.subr.msk.bf16.mxu1 %vm2743_vm1, %v2212_v57  ;;  %v2415_v29 = vpack.i.bf16 %v223_v17, %v222_v18  ;;  %v558_v17 = vld [vmem:[%s3100_s5 + $0x10] sm:$0xff]  ;;  %v559_v18 = vld [vmem:[%s3100_s5 + $0x18] sm:$0xff] }
 0x169   :  { %v2787_v14 = vpop.permute.xlu1 %206  ;;  %v2789_v15 = vpop.permute.xlu0 %204 }
 0x16a   :  { %v225_v39 = vmul.f32 %v2787_v14, %v2701_v28  ;;  %v224_v40 = vmul.f32 %v2789_v15, %v2703_v30 }
 0x16c   :  { %v2420_v41 = vpack.i.bf16 %v225_v39, %v224_v40 }
 0x16d   :  { %v2795_v26 = vpop.permute.xlu1 %210  ;;  %v2797_v27 = vpop.permute.xlu0 %208 }
 0x16e   :  { %v227_v33 = vmul.f32 %v2795_v26, %v2701_v28  ;;  %v226_v34 = vmul.f32 %v2797_v27, %v2703_v30 }
 0x16f   :  { %2217 = vmatpush3.bf16.xpose.msk.msra.mxu1 %vm2743_vm1, %v2212_v57 }
 0x170   :  { %2220 = vmatprep.subr.msk.bf16.mxu1 %vm2743_vm1, %v2218_v61  ;;  %v2425_v37 = vpack.i.bf16 %v227_v33, %v226_v34 }
 0x177   :  { %2223 = vmatpush3.bf16.xpose.msk.msra.mxu1 %vm2743_vm1, %v2218_v61 }
 0x17e   :  { %2002 = vmatmul.mubr.msk.f32.vlgmr.msra.gmra.mrb[2].mxu1 %vm74_vm0, %v2701_v28 }
 0x251   :  { %v2003_v2 = vpop.f32.mrb[2].mxu1 }
 0x252   :  { %v346_v3 = vadd.f32 %v2003_v2, %v2772_v0  ;;  %v340_v4 = vpop.f32.mrb[3].mxu1 }
 0x253   :  { %v341_v6 = vadd.f32 %v340_v4, %v2777_v1 }
 0x254   :  { %v353_v7 = vsel %vm349_vm2, %v346_v3, -inf }
 0x255   :  { %354 = vmax.xlane.f32.xlu1 %v353_v7  ;;  %v350_v10 = vsel %vm349_vm2, %v341_v6, -inf  ;;  %v557_v7 = vld [vmem:[%s3100_s5 + $0x8] sm:$0xff] }
 0x256   :  { %351 = vmax.xlane.f32.xlu0 %v350_v10 }
 0x266   :  { %2416 = vrot.lane.b32.xlu1 %v2415_v29, %s2528_s18  ;;  %v2260_v29 = vpack.c.bf16 %v559_v18, %v558_v17  ;;  %v792_v18 = vld [vmem:[%s3106_s11 + $0x18] sm:$0xff] }
 0x26a   :  { %2426 = vrot.lane.b32.xlu1 %v2425_v37, %s2528_s18 }
 0x26c   :  { %2411 = vrot.lane.b32.xlu0 %v2410_v38, %s2528_s18 }
 0x270   :  { %2421 = vrot.lane.b32.xlu0 %v2420_v41, %s2528_s18 }
 0x2e2   :  { %v355_v42 = vpop.xlane.xlu1 %354 }
 0x2e3   :  { %v357_v43 = vsub.f32 %v346_v3, %v355_v42  ;;  %v352_v44 = vpop.xlane.xlu0 %351 }
 0x2e4   :  { %v356_v45 = vsub.f32 %v341_v6, %v352_v44  ;;  %v556_v6 = vld [vmem:[%s3100_s5] sm:$0xff] }
 0x2e5   :  { %v360_v46 = vmul.f32 1.442695, %v357_v43  ;;  %v2256_v10 = vpack.c.bf16 %v557_v7, %v556_v6  ;;  %v1787_v43 = vld [vmem:[%s3101_s6] ss:$0 sm:$0xff]  ;;  %v790_v7 = vld [vmem:[%s3106_s11 + $0x8] sm:$0xff] }
 0x2e6   :  { %v358_v47 = vmul.f32 1.442695, %v356_v45  ;;  %v2417_v30 = vpop.permute.xlu1 %2416  ;;  %v789_v6 = vld [vmem:[%s3106_s11] sm:$0xff] }
 0x2e7   :  { %v2412_v48 = vpop.permute.xlu0 %2411  ;;  %v2419_v52 = vunpack.i.h.bf16 %v2417_v30  ;;  %v2418_v53 = vunpack.i.l.bf16 %v2417_v30  ;;  %2257 = vmatprep.subr.bf16.mxu1 %v2256_v10  ;;  %v2272_v17 = vpack.c.bf16 %v790_v7, %v789_v6 }
 0x2e8   :  { %2470 = vpow2.f32 %v358_v47  ;;  %v2414_v49 = vunpack.i.h.bf16 %v2412_v48  ;;  %v2413_v28 = vunpack.i.l.bf16 %v2412_v48  ;;  %2259 = vmatpush3.bf16.msra.mxu1 %v2256_v10  ;;  %v791_v10 = vld [vmem:[%s3106_s11 + $0x10] sm:$0xff] }
 0x2e9   :  { %2472 = vpow2.f32 %v360_v46  ;;  %v2244_v57 = vpack.c.bf16 %v2419_v52, %v2418_v53  ;;  %2261 = vmatprep.subr.bf16.mxu1 %v2260_v29 }
 0x2ea   :  { %v2240_v50 = vpack.c.bf16 %v2414_v49, %v2413_v28  ;;  %v2427_v60 = vpop.permute.xlu1 %2426 }
 0x2eb   :  { %v2422_v54 = vpop.permute.xlu0 %2421  ;;  %v2429_v61 = vunpack.i.h.bf16 %v2427_v60  ;;  %v2428_v2 = vunpack.i.l.bf16 %v2427_v60  ;;  %v696_v60 = vld [vmem:[%s3104_s9 + $0x8] sm:$0xff] }
 0x2ec   :  { %2241 = vmatprep.subr.bf16.mxu0 %v2240_v50  ;;  %v2424_v58 = vunpack.i.h.bf16 %v2422_v54  ;;  %v2423_v59 = vunpack.i.l.bf16 %v2422_v54  ;;  %2263 = vmatpush3.bf16.msra.mxu1 %v2260_v29  ;;  %v2276_v29 = vpack.c.bf16 %v792_v18, %v791_v10 }
 0x2ed   :  { %v2252_v4 = vpack.c.bf16 %v2429_v61, %v2428_v2  ;;  %v697_v2 = vld [vmem:[%s3104_s9 + $0x10] sm:$0xff]  ;;  %2273 = vmatprep.subr.bf16.mxu1 %v2272_v17 }
 0x2ee   :  { %v2248_v3 = vpack.c.bf16 %v2424_v58, %v2423_v59 }
 0x2f2   :  { %v2471_v55 = vpop.eup %2470 }
 0x2f3   :  { %v2473_v56 = vpop.eup %2472  ;;  %2020 = vmatprep.mubr.msk.f32.mxu0 %vm349_vm2, %v2471_v55 }
 0x2f4   :  { %2021 = vmatmul.mubr.msk.f32.vlgmr.msra.gmra.mrb[0].mxu0 %vm349_vm2, %v2473_v56 }
 0x2f5   :  { %2243 = vmatpush3.bf16.msra.mxu0 %v2240_v50  ;;  %2039 = vmatprep.mubr.msk.f32.mxu0 %vm349_vm2, %v2471_v55 }
 0x2f6   :  { %2245 = vmatprep.subr.bf16.mxu0 %v2244_v57 }
 0x2f9   :  { %2247 = vmatpush3.bf16.msra.mxu0 %v2244_v57 }
 0x2fa   :  { %2249 = vmatprep.subr.bf16.mxu0 %v2248_v3 }
 0x2fd   :  { %2251 = vmatpush3.bf16.msra.mxu0 %v2248_v3  ;;  %v698_v3 = vld [vmem:[%s3104_s9 + $0x18] sm:$0xff] }
 0x2fe   :  { %2253 = vmatprep.subr.bf16.mxu0 %v2252_v4 }
 0x301   :  { %2255 = vmatpush3.bf16.msra.mxu0 %v2252_v4  ;;  %v2268_v4 = vpack.c.bf16 %v698_v3, %v697_v2 }
 0x304   :  { %2040 = vmatmul.mubr.msk.f32.vlgmr.msra.gmra.mrb[2].mxu0 %vm349_vm2, %v2473_v56 }
 0x3c7   :  { %v2022_v33 = vpop.f32.mrb[0].mxu0 }
 0x3c8   :  { %v434_v34 = vpop.f32.mrb[1].mxu0  ;;  %v551_v35 = vmax.f32 %v2022_v33, 1e-30  ;;  %v793_v33 = vld [vmem:[%s3106_s11 + $0x20] sm:$0xff] }
 0x3c9   :  { %v550_v36 = vmax.f32 %v434_v34, 1e-30  ;;  %v794_v34 = vld [vmem:[%s3106_s11 + $0x28] sm:$0xff] }
 0x3ca   :  { %2474 = vrcp.f32 %v551_v35  ;;  %v2280_v35 = vpack.c.bf16 %v794_v34, %v793_v33 }
 0x3cb   :  { %2476 = vrcp.f32 %v550_v36 }
 0x3d4   :  { %v2475_v37 = vpop.eup %2474 }
 0x3d5   :  { %v2477_v39 = vpop.eup %2476 }
 0x3d7   :  { %v2041_v38 = vpop.f32.mrb[2].mxu0 }
 0x3d8   :  { %v555_v40 = vmul.f32 %v2475_v37, %v2041_v38  ;;  %v541_v41 = vpop.f32.mrb[3].mxu0 }
 0x3d9   :  { %v554_v42 = vmul.f32 %v2477_v39, %v541_v41 }
 0x3db   :  { %2050 = vmatprep.mubr.msk.f32.mxu1 %vm74_vm0, %v554_v42 }
 0x3dc   :  { %2051 = vmatmul.mubr.msk.f32.vlgmr.msra.gmra.mrb[4].mxu1 %vm74_vm0, %v555_v40 }
 0x3dd   :  { %2275 = vmatpush3.bf16.msra.mxu1 %v2272_v17 }
 0x3de   :  { %2277 = vmatprep.subr.bf16.mxu1 %v2276_v29 }
 0x3e1   :  { %2279 = vmatpush3.bf16.msra.mxu1 %v2276_v29 }
 0x3e2   :  { %2281 = vmatprep.subr.bf16.mxu1 %v2280_v35 }
 0x3e5   :  { %2283 = vmatpush3.bf16.msra.mxu1 %v2280_v35 }
 0x4af   :  { %v2052_v44 = vpop.f32.mrb[4].mxu1 }
 0x4b0   :  { %v645_v45 = vadd.f32 %v2052_v44, %v1787_v43  ;;  %v639_v46 = vpop.f32.mrb[5].mxu1 }
 0x4b1   :  { %v640_v47 = vadd.f32 %v1787_v43, %v639_v46  ;;  %v1790_v43 = vld [vmem:[%s3102_s7] ss:$0 sm:$0xff] }
 0x4b2   :  { %v649_v48 = vadd.f32 %v645_v45, %v2660_v13  ;;  %v1791_v45 = vld [vmem:[%s3103_s8] ss:$0 sm:$0xff] }
 0x4b3   :  { %v648_v49 = vadd.f32 %v640_v47, %v2627_v5  ;;  %v695_v5 = vld [vmem:[%s3104_s9] sm:$0xff] }
 0x4b4   :  { %v655_v28 = vsel %vm74_vm0, %v649_v48, 0.0  ;;  %v2264_v61 = vpack.c.bf16 %v696_v60, %v695_v5  ;;  %v1795_v5 = vld [vmem:[%s3107_s12] ss:$0 sm:$0xff] }
 0x4b5   :  { %656 = vadd.xlane.f32.xlu1 %v655_v28  ;;  %v652_v50 = vsel %vm74_vm0, %v648_v49, 0.0 }
 0x4b6   :  { %653 = vadd.xlane.f32.xlu0 %v652_v50  ;;  %2265 = vmatprep.subr.bf16.mxu0 %v2264_v61 }
 0x4b7   :  { %2267 = vmatpush3.bf16.msra.mxu0 %v2264_v61 }
 0x4b8   :  { %2269 = vmatprep.subr.bf16.mxu0 %v2268_v4 }
 0x4bb   :  { %2271 = vmatpush3.bf16.msra.mxu0 %v2268_v4 }
 0x542   :  { %v657_v30 = vpop.xlane.xlu1 %656 }
 0x543   :  { %v660_v52 = vmul.f32 0.03125, %v657_v30  ;;  %v654_v53 = vpop.xlane.xlu0 %653  ;;  %v795_v30 = vld [vmem:[%s3106_s11 + $0x30] sm:$0xff] }
 0x544   :  { %v659_v54 = vmul.f32 0.03125, %v654_v53 }
 0x545   :  { %v662_v55 = vsub.f32 %v649_v48, %v660_v52  ;;  %v796_v52 = vld [vmem:[%s3106_s11 + $0x38] sm:$0xff] }
 0x546   :  { %v661_v56 = vsub.f32 %v648_v49, %v659_v54  ;;  %v2284_v53 = vpack.c.bf16 %v796_v52, %v795_v30  ;;  %v1792_v54 = vld [vmem:[%s3105_s10] ss:$0 sm:$0xff] }
 0x547   :  { %v664_v59 = vmul.f32 %v662_v55, %v662_v55  ;;  %v1799_v52 = vld [vmem:[%s3109_s14] ss:$0 sm:$0xff] }
 0x548   :  { %v663_v57 = vmul.f32 %v661_v56, %v661_v56  ;;  %2285 = vmatprep.subr.bf16.mxu1 %v2284_v53 }
 0x549   :  { %v668_v13 = vsel %vm74_vm0, %v664_v59, 0.0  ;;  %2287 = vmatpush3.bf16.msra.mxu1 %v2284_v53 }
 0x54a   :  { %v665_v58 = vsel %vm74_vm0, %v663_v57, 0.0  ;;  %2321 = vmatprep.subr.bf16.mxu1 %v2650_v11 }
 0x54b   :  { %666 = vadd.xlane.f32.xlu0 %v665_v58 }
 0x54f   :  { %669 = vadd.xlane.f32.xlu0 %v668_v13 }
 0x5d8   :  { %v667_v36 = vpop.xlane.xlu0 %666 }
 0x5d9   :  { %v671_v37 = vmul.f32 0.03125, %v667_v36  ;;  %v1800_v36 = vld [vmem:[%s3098_s3 + $0x20] sm:$0xff] }
 0x5db   :  { %v673_v38 = vadd.f32 1e-05, %v671_v37  ;;  %v1801_v37 = vld [vmem:[%s3098_s3 + $0x28] sm:$0xff] }
 0x5dc   :  { %v670_v39 = vpop.xlane.xlu0 %669 }
 0x5dd   :  { %2478 = vrsqrt.f32 %v673_v38  ;;  %v672_v40 = vmul.f32 0.03125, %v670_v39  ;;  %v2288_v38 = vpack.c.bf16 %v1801_v37, %v1800_v36  ;;  %v1802_v39 = vld [vmem:[%s3098_s3 + $0x30] sm:$0xff] }
 0x5df   :  { %v674_v41 = vadd.f32 1e-05, %v672_v40  ;;  %2289 = vmatprep.subr.bf16.mxu0 %v2288_v38  ;;  %v1803_v40 = vld [vmem:[%s3098_s3 + $0x38] sm:$0xff]  ;;  %s2529_s3 = smov [#allocation2]  }
 0x5e0   :  { %s1759_s26 = sshll.u32 %s2529_s3, 4  ;;  %s1760_s26 = int_to_ptr.vmem [resolvable:$true] %s1759_s26 }
 0x5e1   :  { %2480 = vrsqrt.f32 %v674_v41  ;;  %v2292_v41 = vpack.c.bf16 %v1803_v40, %v1802_v39  ;;  %s2502_s27 = scalar_lea.vmem %s1760_s26, 256  ;;  %p2507_p1 = scmp.lt.s32.totalorder %s1760_s26, %s1760_s26 }
 0x5e2   :  { %p2503_p0 = scmp.ne.s32.totalorder %s1760_s26, %s2502_s27  ;;  %p2508_p2 = scmp.lt.s32.totalorder %s2502_s27, %s2502_s27 }
 0x5e4   :  { %p2509_p3 = por %p2508_p2, %p2507_p1 }
 0x5e6   :  { %p2510_p4 = pnand %p2509_p3, %p2503_p0 }
 0x5e7   :  { %v2479_v42 = vpop.eup %2478 }
 0x5e8   :  { %v677_v44 = vmul.f32 %v2479_v42, %v661_v56 }
 0x5ea   :  { %v685_v46 = vmul.f32 %v1790_v43, %v677_v44 }
 0x5eb   :  { %v2481_v47 = vpop.eup %2480 }
 0x5ec   :  { %v678_v48 = vmul.f32 %v2481_v47, %v662_v55  ;;  %v693_v49 = vadd.f32 %v1791_v45, %v685_v46 }
 0x5ee   :  { %v686_v28 = vmul.f32 %v1790_v43, %v678_v48  ;;  %2061 = vmatprep.mubr.msk.f32.mxu0 %vm74_vm0, %v693_v49 }
 0x5f0   :  { %v694_v50 = vadd.f32 %v1791_v45, %v686_v28 }
 0x5f2   :  { %2062 = vmatmul.mubr.msk.f32.vlgmr.msra.gmra.mrb[4].mxu0 %vm74_vm0, %v694_v50 }
 0x5f3   :  { %2291 = vmatpush3.bf16.msra.mxu0 %v2288_v38 }
 0x5f4   :  { %2293 = vmatprep.subr.bf16.mxu0 %v2292_v41 }
 0x5f7   :  { %2295 = vmatpush3.bf16.msra.mxu0 %v2292_v41 }
 0x6c5   :  { %v2063_v55 = vpop.f32.mrb[4].mxu0 }
 0x6c6   :  { %v784_v56 = vadd.f32 %v2063_v55, %v1792_v54  ;;  %v778_v57 = vpop.f32.mrb[5].mxu0 }
 0x6c7   :  { %v779_v58 = vadd.f32 %v1792_v54, %v778_v57  ;;  %v1805_v57 = vld [vmem:[%s3099_s4 + $0x1] ss:$0 sm:$0xff] }
 0x6c8   :  { %v788_v13 = vmax.f32 %v784_v56, 0.0 }
 0x6c9   :  { %v787_v59 = vmax.f32 %v779_v58, 0.0 }
 0x6cb   :  { %2080 = vmatprep.mubr.msk.f32.mxu1 %vm349_vm2, %v787_v59 }
 0x6cc   :  { %2081 = vmatmul.mubr.msk.f32.vlgmr.msra.gmra.mrb[6].mxu1 %vm349_vm2, %v788_v13 }
 0x6cd   :  { %2323 = vmatpush3.bf16.msra.mxu1 %v2650_v11 }
 0x6ce   :  { %2325 = vmatprep.subr.bf16.mxu1 %v2653_v12 }
 0x6d1   :  { %2327 = vmatpush3.bf16.msra.mxu1 %v2653_v12 }
 0x6d2   :  { %2329 = vmatprep.subr.bf16.mxu1 %v2668_v16 }
 0x6d5   :  { %2331 = vmatpush3.bf16.msra.mxu1 %v2668_v16 }
 0x6d6   :  { %2333 = vmatprep.subr.bf16.mxu1 %v2680_v19 }
 0x6d9   :  { %2335 = vmatpush3.bf16.msra.mxu1 %v2680_v19 }
 0x79f   :  { %v2082_v60 = vpop.f32.mrb[6].mxu1 }
 0x7a0   :  { %v882_v61 = vadd.f32 %v2082_v60, %v1795_v5  ;;  %v876_v2 = vpop.f32.mrb[7].mxu1 }
 0x7a1   :  { %v877_v11 = vadd.f32 %v1795_v5, %v876_v2 }
 0x7a2   :  { %v886_v3 = vadd.f32 %v882_v61, %v694_v50 }
 0x7a3   :  { %v885_v4 = vadd.f32 %v877_v11, %v693_v49  ;;  %v1798_v49 = vld [vmem:[%s3108_s13] ss:$0 sm:$0xff] }
 0x7a4   :  { %v892_v12 = vsel %vm74_vm0, %v886_v3, 0.0 }
 0x7a5   :  { %893 = vadd.xlane.f32.xlu0 %v892_v12  ;;  %v889_v6 = vsel %vm74_vm0, %v885_v4, 0.0 }
 0x7a6   :  { %890 = vadd.xlane.f32.xlu1 %v889_v6 }
 0x832   :  { %v894_v16 = vpop.xlane.xlu0 %893 }
 0x833   :  { %v896_v7 = vmul.f32 0.03125, %v894_v16  ;;  %v891_v10 = vpop.xlane.xlu1 %890 }
 0x834   :  { %v895_v19 = vmul.f32 0.03125, %v891_v10 }
 0x835   :  { %v898_v17 = vsub.f32 %v886_v3, %v896_v7 }
 0x836   :  { %v897_v18 = vsub.f32 %v885_v4, %v895_v19 }
 0x837   :  { %v900_v29 = vmul.f32 %v898_v17, %v898_v17 }
 0x838   :  { %v899_v33 = vmul.f32 %v897_v18, %v897_v18 }
 0x839   :  { %v904_v34 = vsel %vm74_vm0, %v900_v29, 0.0 }
 0x83a   :  { %905 = vadd.xlane.f32.xlu0 %v904_v34  ;;  %v901_v35 = vsel %vm74_vm0, %v899_v33, 0.0 }
 0x83b   :  { %902 = vadd.xlane.f32.xlu1 %v901_v35 }
 0x8c7   :  { %v906_v42 = vpop.xlane.xlu0 %905 }
 0x8c8   :  { %v908_v43 = vmul.f32 0.03125, %v906_v42  ;;  %v903_v44 = vpop.xlane.xlu1 %902 }
 0x8c9   :  { %v907_v45 = vmul.f32 0.03125, %v903_v44 }
 0x8ca   :  { %v910_v46 = vadd.f32 1e-05, %v908_v43 }
 0x8cb   :  { %v909_v47 = vadd.f32 1e-05, %v907_v45 }
 0x8cc   :  { %2482 = vrsqrt.f32 %v910_v46 }
 0x8cd   :  { %2484 = vrsqrt.f32 %v909_v47 }
 0x8d6   :  { %v2483_v48 = vpop.eup %2482 }
 0x8d7   :  { %v2485_v28 = vpop.eup %2484  ;;  %v914_v50 = vmul.f32 %v2483_v48, %v898_v17 }
 0x8d8   :  { %v913_v30 = vmul.f32 %v2485_v28, %v897_v18 }
 0x8d9   :  { %v922_v53 = vmul.f32 %v1798_v49, %v914_v50 }
 0x8da   :  { %v921_v54 = vmul.f32 %v1798_v49, %v913_v30 }
 0x8db   :  { %v2926_v56 = vadd.f32 %v1799_v52, %v922_v53 }
 0x8dc   :  { %v2924_v55 = vadd.f32 %v1799_v52, %v921_v54 }
 0x8de   :  { %2091 = vmatprep.mubr.msk.f32.mxu0 %vm74_vm0, %v2924_v55 }
 0x8df   :  { %2092 = vmatmul.mubr.msk.f32.vlgmr.msra.gmra.mrb[6].mxu0 %vm74_vm0, %v2926_v56 }
 0x9b2   :  { %v2093_v58 = vpop.f32.mrb[6].mxu0 }
 0x9b3   :  { %v2935_v59 = vadd.f32 %v2093_v58, %v1805_v57  ;;  %v1016_v13 = vpop.f32.mrb[7].mxu0 }
 0x9b4   :  { %v1017_v5 = vadd.f32 %v1805_v57, %v1016_v13 }
 0x9b5   :  { %v1028_v60 = vmul.f32 %v2935_v59, %v2690_v22  ;;  %v1026_v61 = vmul.f32 %v2935_v59, %v2692_v23  ;;  %v1030_v6 = vmul.f32 %v2935_v59, %v2694_v24  ;;  %v1032_v16 = vmul.f32 %v2935_v59, %v2705_v31 }
 0x9b6   :  { %2110 = vmatprep.mubr.msk.f32.mxu0 %vm74_vm0, %v1017_v5  ;;  %v1027_v2 = vmul.f32 %v1017_v5, %v2686_v20  ;;  %v1025_v11 = vmul.f32 %v1017_v5, %v2688_v21  ;;  %v1029_v12 = vmul.f32 %v1017_v5, %v2696_v25  ;;  %v1031_v23 = vmul.f32 %v1017_v5, %v2707_v32 }
 0x9b7   :  { %v1035_v44 = vmul.f32 %v1017_v5, %v2784_v9  ;;  %v1036_v51 = vmul.f32 %v2935_v59, %v2782_v8  ;;  %v1039_v46 = vmul.f32 %v1017_v5, %v2797_v27  ;;  %v1034_v47 = vmul.f32 %v2935_v59, %v2765_v62 }
 0x9b8   :  { %v2435_v3 = vpack.i.bf16 %v1028_v60, %v1027_v2  ;;  %v2430_v4 = vpack.i.bf16 %v1026_v61, %v1025_v11  ;;  %v2440_v22 = vpack.i.bf16 %v1030_v6, %v1029_v12  ;;  %v2445_v20 = vpack.i.bf16 %v1032_v16, %v1031_v23  ;;  %v1823_v23 = vld [vmem:[%s3100_s5 + $0x28] sm:$0xff] }
 0x9b9   :  { %v2455_v45 = vpack.i.bf16 %v1036_v51, %v1035_v44  ;;  %v1037_v49 = vmul.f32 %v1017_v5, %v2789_v15  ;;  %v1038_v8 = vmul.f32 %v2935_v59, %v2787_v14 }
 0x9ba   :  { %2436 = vrot.lane.b32.xlu0 %v2435_v3, %s2527_s17  ;;  %2431 = vrot.lane.b32.xlu1 %v2430_v4, %s2527_s17 }
 0x9bb   :  { %v2460_v27 = vpack.i.bf16 %v1038_v8, %v1037_v49  ;;  %v1836_v8 = vld [vmem:[%s3104_s9 + $0x30] sm:$0xff] }
 0x9be   :  { %2441 = vrot.lane.b32.xlu1 %v2440_v22, %s2527_s17  ;;  %v1822_v22 = vld [vmem:[%s3100_s5 + $0x20] sm:$0xff] }
 0x9bf   :  { %v2352_v16 = vpack.c.bf16 %v1823_v23, %v1822_v22 }
 0x9c2   :  { %2446 = vrot.lane.b32.xlu1 %v2445_v20, %s2527_s17  ;;  %v1824_v20 = vld [vmem:[%s3100_s5 + $0x30] sm:$0xff] }
 0xa2c   :  { %v2437_v21 = vpop.permute.xlu0 %2436  ;;  %v2432_v25 = vpop.permute.xlu1 %2431 }
 0xa2d   :  { %v2439_v7 = vunpack.i.h.bf16 %v2437_v21  ;;  %v2438_v10 = vunpack.i.l.bf16 %v2437_v21  ;;  %v2434_v24 = vunpack.i.h.bf16 %v2432_v25  ;;  %v2433_v19 = vunpack.i.l.bf16 %v2432_v25  ;;  %v1825_v21 = vld [vmem:[%s3100_s5 + $0x38] sm:$0xff] }
 0xa2e   :  { %v2356_v25 = vpack.c.bf16 %v1825_v21, %v1824_v20  ;;  %v1849_v20 = vld [vmem:[%s3106_s11 + $0x78] sm:$0xff] }
 0xa2f   :  { %v2296_v17 = vpack.c.bf16 %v2434_v24, %v2433_v19  ;;  %v2302_v18 = vpack.c.bf16 %v2439_v7, %v2438_v10 }
 0xa30   :  { %v2442_v32 = vpop.permute.xlu1 %2441 }
 0xa31   :  { %2298 = vmatprep.subr.msk.bf16.mxu0 %vm2743_vm1, %v2296_v17  ;;  %v2444_v31 = vunpack.i.h.bf16 %v2442_v32  ;;  %v2443_v29 = vunpack.i.l.bf16 %v2442_v32 }
 0xa32   :  { %2301 = vmatpush3.bf16.xpose.msk.msra.mxu0 %vm2743_vm1, %v2296_v17 }
 0xa33   :  { %2304 = vmatprep.subr.msk.bf16.mxu0 %vm2743_vm1, %v2302_v18  ;;  %v2308_v33 = vpack.c.bf16 %v2444_v31, %v2443_v29 }
 0xa34   :  { %v2447_v34 = vpop.permute.xlu1 %2446 }
 0xa35   :  { %v2449_v35 = vunpack.i.h.bf16 %v2447_v34  ;;  %v2448_v36 = vunpack.i.l.bf16 %v2447_v34  ;;  %v1827_v34 = vld [vmem:[%s3101_s6 + $0x1] ss:$0 sm:$0xff] }
 0xa37   :  { %v2314_v37 = vpack.c.bf16 %v2449_v35, %v2448_v36 }
 0xa3a   :  { %2307 = vmatpush3.bf16.xpose.msk.msra.mxu0 %vm2743_vm1, %v2302_v18 }
 0xa3b   :  { %2310 = vmatprep.subr.msk.bf16.mxu0 %vm2743_vm1, %v2308_v33 }
 0xa42   :  { %2313 = vmatpush3.bf16.xpose.msk.msra.mxu0 %vm2743_vm1, %v2308_v33 }
 0xa43   :  { %2316 = vmatprep.subr.msk.bf16.mxu0 %vm2743_vm1, %v2314_v37 }
 0xa4a   :  { %2319 = vmatpush3.bf16.xpose.msk.msra.mxu0 %vm2743_vm1, %v2314_v37 }
 0xa4b   :  { %2353 = vmatprep.subr.bf16.mxu0 %v2352_v16 }
 0xa51   :  { %2111 = vmatmul.mubr.msk.f32.vlgmr.msra.gmra.mrb[8].mxu0 %vm74_vm0, %v2935_v59 }
 0xa52   :  { %2355 = vmatpush3.bf16.msra.mxu0 %v2352_v16  ;;  %v1848_v16 = vld [vmem:[%s3106_s11 + $0x70] sm:$0xff] }
 0xa53   :  { %2357 = vmatprep.subr.bf16.mxu0 %v2356_v25  ;;  %v2380_v21 = vpack.c.bf16 %v1849_v20, %v1848_v16 }
 0xa56   :  { %2359 = vmatpush3.bf16.msra.mxu0 %v2356_v25  ;;  %v1839_v25 = vld [vmem:[%s3105_s10 + $0x1] ss:$0 sm:$0xff] }
 0xb24   :  { %v2112_v38 = vpop.f32.mrb[8].mxu0 }
 0xb25   :  { %v1159_v39 = vadd.f32 %v2112_v38, %v2772_v0  ;;  %v1153_v40 = vpop.f32.mrb[9].mxu0  ;;  %v1040_v0 = vmul.f32 %v2935_v59, %v2795_v26 }
 0xb26   :  { %v1154_v41 = vadd.f32 %v1153_v40, %v2777_v1  ;;  %v1033_v1 = vmul.f32 %v1017_v5, %v2767_v63 }
 0xb27   :  { %v1165_v42 = vsel %vm349_vm2, %v1159_v39, -inf  ;;  %v2465_v48 = vpack.i.bf16 %v1040_v0, %v1039_v46 }
 0xb28   :  { %1166 = vmax.xlane.f32.xlu1 %v1165_v42  ;;  %v1162_v43 = vsel %vm349_vm2, %v1154_v41, -inf  ;;  %v2450_v9 = vpack.i.bf16 %v1034_v47, %v1033_v1 }
 0xb29   :  { %1163 = vmax.xlane.f32.xlu0 %v1162_v43 }
 0xb39   :  { %2456 = vrot.lane.b32.xlu1 %v2455_v45, %s2528_s18 }
 0xb3d   :  { %2466 = vrot.lane.b32.xlu1 %v2465_v48, %s2528_s18 }
 0xb3f   :  { %2451 = vrot.lane.b32.xlu0 %v2450_v9, %s2528_s18  ;;  %v1835_v9 = vld [vmem:[%s3104_s9 + $0x28] sm:$0xff] }
 0xb43   :  { %2461 = vrot.lane.b32.xlu0 %v2460_v27, %s2528_s18  ;;  %v1837_v27 = vld [vmem:[%s3104_s9 + $0x38] sm:$0xff] }
 0xbb5   :  { %v1167_v26 = vpop.xlane.xlu1 %1166 }
 0xbb6   :  { %v1169_v28 = vsub.f32 %v1159_v39, %v1167_v26  ;;  %v1164_v63 = vpop.xlane.xlu0 %1163  ;;  %v2364_v26 = vpack.c.bf16 %v1837_v27, %v1836_v8  ;;  %v1856_v8 = vld [vmem:[%s3108_s13 + $0x1] ss:$0 sm:$0xff] }
 0xbb7   :  { %v1168_v50 = vsub.f32 %v1154_v41, %v1164_v63  ;;  %v1843_v63 = vld [vmem:[%s3106_s11 + $0x48] sm:$0xff] }
 0xbb8   :  { %v1172_v30 = vmul.f32 1.442695, %v1169_v28  ;;  %v1842_v28 = vld [vmem:[%s3106_s11 + $0x40] sm:$0xff] }
 0xbb9   :  { %v1170_v62 = vmul.f32 1.442695, %v1168_v50  ;;  %v2457_v57 = vpop.permute.xlu1 %2456  ;;  %v1844_v50 = vld [vmem:[%s3106_s11 + $0x50] sm:$0xff] }
 0xbba   :  { %v2452_v52 = vpop.permute.xlu0 %2451  ;;  %v2459_v14 = vunpack.i.h.bf16 %v2457_v57  ;;  %v2458_v58 = vunpack.i.l.bf16 %v2457_v57 }
 0xbbb   :  { %2486 = vpow2.f32 %v1170_v62  ;;  %v2454_v53 = vunpack.i.h.bf16 %v2452_v52  ;;  %v2453_v54 = vunpack.i.l.bf16 %v2452_v52  ;;  %v1845_v62 = vld [vmem:[%s3106_s11 + $0x58] sm:$0xff] }
 0xbbc   :  { %2488 = vpow2.f32 %v1172_v30  ;;  %v2340_v60 = vpack.c.bf16 %v2459_v14, %v2458_v58  ;;  %v2368_v30 = vpack.c.bf16 %v1843_v63, %v1842_v28  ;;  %v2372_v52 = vpack.c.bf16 %v1845_v62, %v1844_v50  ;;  %v1857_v63 = vld [vmem:[%s3109_s14 + $0x1] ss:$0 sm:$0xff] }
 0xbbd   :  { %v2336_v15 = vpack.c.bf16 %v2454_v53, %v2453_v54  ;;  %v2467_v11 = vpop.permute.xlu1 %2466  ;;  %v1846_v53 = vld [vmem:[%s3106_s11 + $0x60] sm:$0xff]  ;;  %v1847_v54 = vld [vmem:[%s3106_s11 + $0x68] sm:$0xff] }
 0xbbe   :  { %v2462_v59 = vpop.permute.xlu0 %2461  ;;  %v2469_v3 = vunpack.i.h.bf16 %v2467_v11  ;;  %v2468_v4 = vunpack.i.l.bf16 %v2467_v11  ;;  %2369 = vmatprep.subr.bf16.mxu0 %v2368_v30  ;;  %v1833_v11 = vld [vmem:[%s3103_s8 + $0x1] ss:$0 sm:$0xff] }
 0xbbf   :  { %2337 = vmatprep.subr.bf16.mxu1 %v2336_v15  ;;  %v2464_v61 = vunpack.i.h.bf16 %v2462_v59  ;;  %v2463_v2 = vunpack.i.l.bf16 %v2462_v59 }
 0xbc0   :  { %v2348_v6 = vpack.c.bf16 %v2469_v3, %v2468_v4 }
 0xbc1   :  { %v2344_v12 = vpack.c.bf16 %v2464_v61, %v2463_v2  ;;  %v1832_v61 = vld [vmem:[%s3102_s7 + $0x1] ss:$0 sm:$0xff] }
 0xbc5   :  { %v2487_v13 = vpop.eup %2486 }
 0xbc6   :  { %v2489_v5 = vpop.eup %2488  ;;  %2129 = vmatprep.mubr.msk.f32.mxu1 %vm349_vm2, %v2487_v13 }
 0xbc7   :  { %2130 = vmatmul.mubr.msk.f32.vlgmr.msra.gmra.mrb[8].mxu1 %vm349_vm2, %v2489_v5 }
 0xbc8   :  { %2339 = vmatpush3.bf16.msra.mxu1 %v2336_v15  ;;  %2148 = vmatprep.mubr.msk.f32.mxu1 %vm349_vm2, %v2487_v13  ;;  %v2376_v15 = vpack.c.bf16 %v1847_v54, %v1846_v53 }
 0xbc9   :  { %2341 = vmatprep.subr.bf16.mxu1 %v2340_v60 }
 0xbcc   :  { %2343 = vmatpush3.bf16.msra.mxu1 %v2340_v60 }
 0xbcd   :  { %2345 = vmatprep.subr.bf16.mxu1 %v2344_v12 }
 0xbd0   :  { %2347 = vmatpush3.bf16.msra.mxu1 %v2344_v12 }
 0xbd1   :  { %2349 = vmatprep.subr.bf16.mxu1 %v2348_v6 }
 0xbd4   :  { %2351 = vmatpush3.bf16.msra.mxu1 %v2348_v6 }
 0xbd7   :  { %2149 = vmatmul.mubr.msk.f32.vlgmr.msra.gmra.mrb[10].mxu1 %vm349_vm2, %v2489_v5 }
 0xc9a   :  { %v2131_v7 = vpop.f32.mrb[8].mxu1 }
 0xc9b   :  { %v1246_v10 = vpop.f32.mrb[9].mxu1  ;;  %v1363_v24 = vmax.f32 %v2131_v7, 1e-30 }
 0xc9c   :  { %v1362_v19 = vmax.f32 %v1246_v10, 1e-30 }
 0xc9d   :  { %2490 = vrcp.f32 %v1363_v24 }
 0xc9e   :  { %2492 = vrcp.f32 %v1362_v19 }
 0xca7   :  { %v2491_v17 = vpop.eup %2490 }
 0xca8   :  { %v2493_v32 = vpop.eup %2492 }
 0xcaa   :  { %v2150_v18 = vpop.f32.mrb[10].mxu1 }
 0xcab   :  { %v1367_v31 = vmul.f32 %v2491_v17, %v2150_v18  ;;  %v1353_v29 = vpop.f32.mrb[11].mxu1 }
 0xcac   :  { %v1366_v33 = vmul.f32 %v2493_v32, %v1353_v29  ;;  %v1851_v32 = vld [vmem:[%s3107_s12 + $0x1] ss:$0 sm:$0xff] }
 0xcae   :  { %2159 = vmatprep.mubr.msk.f32.mxu0 %vm74_vm0, %v1366_v33 }
 0xcaf   :  { %2160 = vmatmul.mubr.msk.f32.vlgmr.msra.gmra.mrb[10].mxu0 %vm74_vm0, %v1367_v31 }
 0xcb0   :  { %2371 = vmatpush3.bf16.msra.mxu0 %v2368_v30 }
 0xcb1   :  { %2373 = vmatprep.subr.bf16.mxu0 %v2372_v52 }
 0xcb4   :  { %2375 = vmatpush3.bf16.msra.mxu0 %v2372_v52 }
 0xcb5   :  { %2377 = vmatprep.subr.bf16.mxu0 %v2376_v15 }
 0xcb8   :  { %2379 = vmatpush3.bf16.msra.mxu0 %v2376_v15 }
 0xcb9   :  { %2381 = vmatprep.subr.bf16.mxu0 %v2380_v21 }
 0xcbc   :  { %2383 = vmatpush3.bf16.msra.mxu0 %v2380_v21 }
 0xd82   :  { %v2161_v35 = vpop.f32.mrb[10].mxu0 }
 0xd83   :  { %v1459_v36 = vadd.f32 %v2161_v35, %v1827_v34  ;;  %v1453_v37 = vpop.f32.mrb[11].mxu0 }
 0xd84   :  { %v1454_v38 = vadd.f32 %v1827_v34, %v1453_v37 }
 0xd85   :  { %v1463_v39 = vadd.f32 %v1459_v36, %v2926_v56 }
 0xd86   :  { %v1462_v40 = vadd.f32 %v1454_v38, %v2924_v55  ;;  %v1834_v55 = vld [vmem:[%s3104_s9 + $0x20] sm:$0xff] }
 0xd87   :  { %v1471_v41 = vsel %vm74_vm0, %v1463_v39, 0.0  ;;  %v2360_v49 = vpack.c.bf16 %v1835_v9, %v1834_v55 }
 0xd88   :  { %1472 = vadd.xlane.f32.xlu1 %v1471_v41  ;;  %v1468_v42 = vsel %vm74_vm0, %v1462_v40, 0.0 }
 0xd89   :  { %1469 = vadd.xlane.f32.xlu0 %v1468_v42  ;;  %2361 = vmatprep.subr.bf16.mxu1 %v2360_v49 }
 0xd8a   :  { %2363 = vmatpush3.bf16.msra.mxu1 %v2360_v49 }
 0xd8b   :  { %2365 = vmatprep.subr.bf16.mxu1 %v2364_v26 }
 0xd8e   :  { %2367 = vmatpush3.bf16.msra.mxu1 %v2364_v26 }
 0xe15   :  { %v1473_v43 = vpop.xlane.xlu1 %1472 }
 0xe16   :  { %v1475_v44 = vmul.f32 0.03125, %v1473_v43  ;;  %v1470_v51 = vpop.xlane.xlu0 %1469 }
 0xe17   :  { %v1474_v45 = vmul.f32 0.03125, %v1470_v51 }
 0xe18   :  { %v1477_v46 = vsub.f32 %v1463_v39, %v1475_v44 }
 0xe19   :  { %v1476_v0 = vsub.f32 %v1462_v40, %v1474_v45 }
 0xe1a   :  { %v1479_v48 = vmul.f32 %v1477_v46, %v1477_v46 }
 0xe1b   :  { %v1478_v1 = vmul.f32 %v1476_v0, %v1476_v0 }
 0xe1c   :  { %v1483_v56 = vsel %vm74_vm0, %v1479_v48, 0.0 }
 0xe1d   :  { %v1480_v47 = vsel %vm74_vm0, %v1478_v1, 0.0 }
 0xe1e   :  { %1481 = vadd.xlane.f32.xlu0 %v1480_v47 }
 0xe22   :  { %1484 = vadd.xlane.f32.xlu0 %v1483_v56 }
 0xeab   :  { %v1482_v57 = vpop.xlane.xlu0 %1481 }
 0xeac   :  { %v1486_v14 = vmul.f32 0.03125, %v1482_v57 }
 0xeae   :  { %v1488_v58 = vadd.f32 1e-05, %v1486_v14 }
 0xeaf   :  { %v1485_v59 = vpop.xlane.xlu0 %1484 }
 0xeb0   :  { %2494 = vrsqrt.f32 %v1488_v58  ;;  %v1487_v13 = vmul.f32 0.03125, %v1485_v59 }
 0xeb2   :  { %v1489_v5 = vadd.f32 1e-05, %v1487_v13 }
 0xeb4   :  { %2496 = vrsqrt.f32 %v1489_v5 }
 0xeba   :  { %v2495_v60 = vpop.eup %2494 }
 0xebb   :  { %v1492_v2 = vmul.f32 %v2495_v60, %v1476_v0 }
 0xebd   :  { %v1500_v3 = vmul.f32 %v1832_v61, %v1492_v2 }
 0xebe   :  { %v2497_v4 = vpop.eup %2496 }
 0xebf   :  { %v1493_v12 = vmul.f32 %v2497_v4, %v1477_v46  ;;  %v1508_v6 = vadd.f32 %v1833_v11, %v1500_v3 }
 0xec1   :  { %v1501_v22 = vmul.f32 %v1832_v61, %v1493_v12  ;;  %2170 = vmatprep.mubr.msk.f32.mxu1 %vm74_vm0, %v1508_v6 }
 0xec3   :  { %v1509_v23 = vadd.f32 %v1833_v11, %v1501_v22 }
 0xec5   :  { %2171 = vmatmul.mubr.msk.f32.vlgmr.msra.gmra.mrb[12].mxu1 %vm74_vm0, %v1509_v23 }
 0xf98   :  { %v2172_v7 = vpop.f32.mrb[12].mxu1 }
 0xf99   :  { %v1601_v10 = vadd.f32 %v2172_v7, %v1839_v25  ;;  %v1595_v24 = vpop.f32.mrb[13].mxu1 }
 0xf9a   :  { %v1596_v19 = vadd.f32 %v1839_v25, %v1595_v24 }
 0xf9b   :  { %v1605_v18 = vmax.f32 %v1601_v10, 0.0 }
 0xf9c   :  { %v1604_v17 = vmax.f32 %v1596_v19, 0.0 }
 0xf9e   :  { %2189 = vmatprep.mubr.msk.f32.mxu0 %vm349_vm2, %v1604_v17 }
 0xf9f   :  { %2190 = vmatmul.mubr.msk.f32.vlgmr.msra.gmra.mrb[12].mxu0 %vm349_vm2, %v1605_v18 }
0x1072   :  { %v2191_v31 = vpop.f32.mrb[12].mxu0 }
0x1073   :  { %v1701_v29 = vadd.f32 %v2191_v31, %v1851_v32  ;;  %v1695_v33 = vpop.f32.mrb[13].mxu0 }
0x1074   :  { %v1696_v34 = vadd.f32 %v1851_v32, %v1695_v33 }
0x1075   :  { %v1705_v35 = vadd.f32 %v1701_v29, %v1509_v23 }
0x1076   :  { %v1704_v36 = vadd.f32 %v1696_v34, %v1508_v6 }
0x1077   :  { %v1713_v37 = vsel %vm74_vm0, %v1705_v35, 0.0 }
0x1078   :  { %1714 = vadd.xlane.f32.xlu0 %v1713_v37  ;;  %v1710_v38 = vsel %vm74_vm0, %v1704_v36, 0.0 }
0x1079   :  { %1711 = vadd.xlane.f32.xlu1 %v1710_v38 }
0x1105   :  { %v1715_v39 = vpop.xlane.xlu0 %1714 }
0x1106   :  { %v1717_v40 = vmul.f32 0.03125, %v1715_v39  ;;  %v1712_v41 = vpop.xlane.xlu1 %1711 }
0x1107   :  { %v1716_v42 = vmul.f32 0.03125, %v1712_v41 }
0x1108   :  { %v1719_v43 = vsub.f32 %v1705_v35, %v1717_v40 }
0x1109   :  { %v1718_v44 = vsub.f32 %v1704_v36, %v1716_v42 }
0x110a   :  { %v1721_v51 = vmul.f32 %v1719_v43, %v1719_v43 }
0x110b   :  { %v1720_v45 = vmul.f32 %v1718_v44, %v1718_v44 }
0x110c   :  { %v1725_v46 = vsel %vm74_vm0, %v1721_v51, 0.0 }
0x110d   :  { %1726 = vadd.xlane.f32.xlu0 %v1725_v46  ;;  %v1722_v0 = vsel %vm74_vm0, %v1720_v45, 0.0 }
0x110e   :  { %1723 = vadd.xlane.f32.xlu1 %v1722_v0 }
0x119a   :  { %v1727_v1 = vpop.xlane.xlu0 %1726 }
0x119b   :  { %v1729_v47 = vmul.f32 0.03125, %v1727_v1  ;;  %v1724_v48 = vpop.xlane.xlu1 %1723 }
0x119c   :  { %v1728_v56 = vmul.f32 0.03125, %v1724_v48 }
0x119d   :  { %v1731_v55 = vadd.f32 1e-05, %v1729_v47 }
0x119e   :  { %v1730_v9 = vadd.f32 1e-05, %v1728_v56 }
0x119f   :  { %2498 = vrsqrt.f32 %v1731_v55 }
0x11a0   :  { %2500 = vrsqrt.f32 %v1730_v9 }
0x11a9   :  { %v2499_v49 = vpop.eup %2498 }
0x11aa   :  { %v2501_v27 = vpop.eup %2500  ;;  %v1735_v26 = vmul.f32 %v2499_v49, %v1719_v43 }
0x11ab   :  { %v1734_v28 = vmul.f32 %v2501_v27, %v1718_v44 }
0x11ac   :  { %v1743_v50 = vmul.f32 %v1856_v8, %v1735_v26 }
0x11ad   :  { %v1742_v30 = vmul.f32 %v1856_v8, %v1734_v28 }
0x11ae   :  { %v1751_v62 = vadd.f32 %v1857_v63, %v1743_v50 }
0x11af   :  { %v1750_v52 = vadd.f32 %v1857_v63, %v1742_v30 }
0x11b0   :  { %1753 = vst.msk [vmem:[#allocation2 + $0x8] sm:$0xff] %vm74_vm0, %v1751_v62 }
0x11b1   :  { %1752 = vst.msk [vmem:[#allocation2] sm:$0xff] %vm74_vm0, %v1750_v52 }
0x11b2   :  { %2513 = shalt.err (!%p2510_p4)
}
0x11b3   :  { %s2514_s0 = scalar_lea.hbm %s3110_s15, 256 }
0x11b4   :  { %p2515_p5 = scmp.ne.s32.totalorder %s3110_s15, %s2514_s0  ;;  %p2518_p6 = scmp.lt.u32.totalorder %s2514_s0, %s3110_s15 }
0x11b6   :  { %p2520_p7 = pnand %p2518_p6, %p2515_p5 }
0x11b8   :  { %2523 = shalt.err (!%p2520_p7)
}
0x11b9   :  { %s2530_s28 = smov 128   ;;  %s2531_s29 = smov 8  }
0x11ba   :  { %1765 = dma.vmem_to_hbm [thread:$0]  %s1760_s26, 256, %s3110_s15, [#allocation3], %s2530_s28, %s2530_s28, %s2531_s29  }
0x11bb   :  { %2524 = dma.done.wait [#allocation3], 256  }
0x11bc   :  { %2525 = vsyncadd [#allocation3], 4294967040 }
0x11bd   :  { %1769 = vsyncpa [#allocation3], 1 }

</bundles_post_ra>
